<compile_context>
chip_gen: v7x
topology: tpu7x:2x2x1
jax: 0.10.0
libtpu: 0.0.40
codegen_flags: <defaults>
</compile_context>

<pallas_src>
import math

import jax
import jax.numpy as jnp
from jax.experimental import pallas as pl
from jax.experimental.pallas import tpu as pltpu


# ----------------------------- kernels --------------------------------------


def _kernel_f32_out(x_ref, w_ref, b_ref, o_ref):
    """f32 output: accumulate straight into the resident output block.

    x: (tc, bt, kt)  w: (tc, tn, kt)  b: (tc, tn)  o: (tc, bt, tn) f32.
    """
    k = pl.program_id(3)

    @pl.when(k == 0)
    def _init():
        o_ref[...] = jnp.zeros_like(o_ref)

    # One MXU loop, batched over the channel dim; contract In with In so the
    # weight tile is used exactly as stored (no transpose anywhere).
    o_ref[...] += jax.lax.dot_general(
        x_ref[...], w_ref[...],
        dimension_numbers=(((2,), (2,)), ((0,), (0,))),
        preferred_element_type=jnp.float32,
    )

    @pl.when(k == pl.num_programs(3) - 1)
    def _finalize():
        o_ref[...] += b_ref[...][:, None, :]


def _kernel_cast_out(x_ref, w_ref, b_ref, o_ref, acc_ref):
    """Non-f32 output: f32 VMEM accumulator, single cast at the final store."""
    k = pl.program_id(3)

    @pl.when(k == 0)
    def _init():
        acc_ref[...] = jnp.zeros_like(acc_ref)

    acc_ref[...] += jax.lax.dot_general(
        x_ref[...], w_ref[...],
        dimension_numbers=(((2,), (2,)), ((0,), (0,))),
        preferred_element_type=jnp.float32,
    )

    @pl.when(k == pl.num_programs(3) - 1)
    def _finalize():
        o_ref[...] = (acc_ref[...] + b_ref[...][:, None, :]).astype(o_ref.dtype)


# --------------------------- tiling helpers ----------------------------------


def _tpu_vmem_capacity_bytes():
    """Per-generation physical VMEM (128 MiB v5e/v6e, 64 MiB v7x); safe fallback."""
    default = 64 * 1024 * 1024
    try:
        info = pltpu.get_tpu_info()
    except Exception:
        return default
    for attr in ("vmem_capacity_bytes", "vmem_bytes", "vmem_size_bytes"):
        cap = getattr(info, attr, None)
        if cap:
            return int(cap)
    return default


def _sublane_multiple(itemsize):
    # f32 -> 8 sublanes, bf16 -> 16, int8/fp8 -> 32 (full vreg packing).
    return {4: 8, 2: 16, 1: 32}.get(int(itemsize), 8)


def _dedup(seq):
    return list(dict.fromkeys(seq))


# ------------------------------ wrapper --------------------------------------


def linear_with_channels(x, weight, bias=None, mask=None):
    """x: (B, C, In), weight: (C, Out, In), bias: (C, 1, Out) -> (B, C, Out)."""
    B, Cx, In = x.shape
    C, Out, In_w = weight.shape
    if Cx == 1 and C != 1:
        # torch path: x.expand(channels, -1, -1) when x has a single channel.
        x = jnp.broadcast_to(x, (B, C, In))
    else:
        assert Cx == C, "weight/activation channel mismatch"
    assert In_w == In, "weight/activation in_features mismatch"

    if mask is not None:            # module's optional static weight mask
        weight = weight * mask

    out_dtype = jnp.result_type(x.dtype, weight.dtype)
    out_is_f32 = out_dtype == jnp.float32
    if bias is None:
        bias2d = jnp.zeros((C, Out), out_dtype)
    else:
        bias2d = jnp.reshape(bias, (C, Out))

    # Channel-major activation: a single bandwidth-bound wrapper transpose is
    # far cheaper than per-channel relayouts inside every K step of the kernel.
    x_cm = jnp.transpose(x, (1, 0, 2))          # (C, B, In)

    x_item = jnp.dtype(x.dtype).itemsize
    w_item = jnp.dtype(weight.dtype).itemsize
    b_item = jnp.dtype(bias2d.dtype).itemsize
    o_item = jnp.dtype(out_dtype).itemsize

    # ---- per-generation VMEM budget -----------------------------------------
    cap = _tpu_vmem_capacity_bytes()
    budget = int(cap * 0.65)                    # working-set target for tiling
    vmem_limit = int(cap * 0.80)                # explicit scoped-VMEM limit

    # Channels per step: major dim of the 3-D blocks and the sublane dim of
    # the 2-D bias block, so a multiple of 8 (or full C) keeps blocks legal.
    tc = 8 if C % 8 == 0 else C

    # Sublane (second-minor) multiple follows the packed dtype of the arrays
    # whose blocks put `bt` in the sublane dim (activations and output).
    sub = max(_sublane_multiple(x_item), _sublane_multiple(o_item))

    bt_cands = _dedup([c for c in (B, 1024, 512, 256, 128, 64, 32, 16, 8)
                       if c > 0 and c % sub == 0 and B % c == 0]) or [B]
    kt_cands = _dedup([c for c in (In, 2048, 1024, 512, 256, 128)
                       if c % 128 == 0 and In % c == 0]) or [In]
    tn_cands = _dedup([c for c in (Out, 2048, 1024, 512, 256, 128)
                       if c % 128 == 0 and Out % c == 0]) or [Out]

    def vmem_need(bt_, tn_, kt_):
        # Double-buffered pipelined operands + (optional) single f32 scratch.
        x_b = 2 * tc * bt_ * kt_ * x_item
        w_b = 2 * tc * tn_ * kt_ * w_item
        bb = 2 * tc * tn_ * b_item
        o_b = 2 * tc * bt_ * tn_ * o_item
        acc = 0 if out_is_f32 else tc * bt_ * tn_ * 4
        return x_b + w_b + bb + o_b + acc

    def pick_tiles():
        # Greedy: largest batch tile (cuts weight HBM re-streaming), then the
        # largest K tile (biggest pipelining lever), then the largest N tile.
        for bt_ in bt_cands:
            for kt_ in kt_cands:
                for tn_ in tn_cands:
                    if vmem_need(bt_, tn_, kt_) <= budget:
                        return bt_, kt_, tn_
        # TODO(synk): pad In/Out to multiples of 128 when even the smallest
        #             legal tiles exceed the VMEM budget (non-128-multiple dims).
        return bt_cands[-1], kt_cands[-1], tn_cands[-1]

    bt, kt, tn = pick_tiles()
    n_c, n_b, n_n, n_k = C // tc, B // bt, Out // tn, In // kt

    # Weight HBM traffic: with (c, b, n, k) ordering the weight tile is
    # re-fetched for every batch tile.  When the whole K dim fits in one tile
    # and weights dominate activations, iterate batch innermost instead so a
    # weight tile stays resident across all batch tiles.
    weight_bytes = C * Out * In * w_item
    x_bytes = C * B * In * x_item
    batch_innermost = (n_k == 1 and n_n > 1 and n_b > 1
                       and weight_bytes * (n_b - 1) > x_bytes * (n_n - 1))

    if batch_innermost:
        grid = (n_c, n_n, n_b, n_k)
        x_map = lambda c, n, b, k: (c, b, k)
        w_map = lambda c, n, b, k: (c, n, k)
        bias_map = lambda c, n, b, k: (c, n)
        out_map = lambda c, n, b, k: (c, b, n)
    else:
        grid = (n_c, n_b, n_n, n_k)
        x_map = lambda c, b, n, k: (c, b, k)
        w_map = lambda c, b, n, k: (c, n, k)
        bias_map = lambda c, b, n, k: (c, n)
        out_map = lambda c, b, n, k: (c, b, n)

    if out_is_f32:
        kernel = _kernel_f32_out
        scratch = []
    else:
        kernel = _kernel_cast_out
        scratch = [pltpu.VMEM((tc, bt, tn), jnp.float32)]

    out_cm = pl.pallas_call(
        kernel,
        out_shape=jax.ShapeDtypeStruct((C, B, Out), out_dtype),
        grid_spec=pltpu.PrefetchScalarGridSpec(
            num_scalar_prefetch=0,
            grid=grid,                                   # (..., k) — k last/arbitrary
            in_specs=[
                pl.BlockSpec((tc, bt, kt), x_map),       # activations, channel-major
                pl.BlockSpec((tc, tn, kt), w_map),       # weight as stored
                pl.BlockSpec((tc, tn), bias_map),        # bias, lane-dense
            ],
            out_specs=pl.BlockSpec((tc, bt, tn), out_map),
            scratch_shapes=scratch,
        ),
        compiler_params=pltpu.CompilerParams(
            dimension_semantics=("parallel", "parallel", "parallel", "arbitrary"),
            vmem_limit_bytes=vmem_limit,
        ),
    )(x_cm, weight, bias2d)

    # Back to the module's batch-major output layout (B, C, Out).
    return jnp.transpose(out_cm, (1, 0, 2))


def init_params(key, channels, out_features, in_features, dtype=jnp.float32):
    """Matches nn.init.kaiming_uniform_(a=sqrt(5)) + uniform bias init."""
    kw, kb = jax.random.split(key)
    bound = 1.0 / math.sqrt(in_features)   # kaiming_uniform(a=sqrt(5)) == U(-1/sqrt(fan_in), ...)
    weight = jax.random.uniform(
        kw, (channels, out_features, in_features), dtype, -bound, bound)
    bias = jax.random.uniform(
        kb, (channels, 1, out_features), dtype, -bound, bound)
    return weight, bias


# TODO(synk): MatrixMultiplicationStoreSparseInput (reduce_mem sparse-COO
#             activation stashing) only changes backward/autograd memory; the
#             forward math is identical, so it is not reproduced here.

if __name__ == "__main__":
    key = jax.random.PRNGKey(0)
    kx, kp = jax.random.split(key)

    # Small, layout-friendly demo shapes (lane-dense Out, channel grid of 2).
    batch, channels, in_features, out_features = 32, 16, 256, 128

    x = jax.random.normal(kx, (batch, channels, in_features), jnp.float32)
    weight, bias = init_params(kp, channels, out_features, in_features)

    out = jax.block_until_ready(linear_with_channels(x, weight, bias))

    # pure-JAX reference (same math as the torch.bmm path)
    ref = jnp.einsum("bci,coi->bco", x, weight,
                     precision=jax.lax.Precision.HIGHEST)
    ref = ref + jnp.transpose(bias, (1, 0, 2))

    assert out.shape == (batch, channels, out_features)
    err = float(jnp.max(jnp.abs(out - ref)))
    assert jnp.allclose(out, ref, atol=1e-3, rtol=1e-3), err

    print("KERNEL_OK")
</pallas_src>

<mosaic_0001>
module attributes {stable_mosaic.version = 11 : i64} {
  func.func @_kernel_f32_out(%arg0: i32, %arg1: i32, %arg2: i32, %arg3: i32, %arg4: memref<8x32x256xf32, #tpu.memory_space<vmem>>, %arg5: memref<8x128x256xf32, #tpu.memory_space<vmem>>, %arg6: memref<8x128xf32, #tpu.memory_space<vmem>>, %arg7: memref<8x32x128xf32, #tpu.memory_space<vmem>>) attributes {dimension_semantics = [#tpu.dimension_semantics<parallel>, #tpu.dimension_semantics<parallel>, #tpu.dimension_semantics<parallel>, #tpu.dimension_semantics<arbitrary>], iteration_bounds = array<i64: 2, 1, 1, 1>, scalar_prefetch = 0 : i64, scratch_operands = 0 : i64, tpu.core_type = #tpu.core_type<tc>, window_params = [{transform_indices = @transform_0, window_bounds = array<i64: 8, 32, 256>}, {transform_indices = @transform_1, window_bounds = array<i64: 8, 128, 256>}, {transform_indices = @transform_2, window_bounds = array<i64: 8, 128>}, {transform_indices = @transform_3, window_bounds = array<i64: 8, 32, 128>}]} {
    %c0_i32 = arith.constant 0 : i32
    %0 = arith.cmpi eq, %arg3, %c0_i32 : i32
    %1 = arith.extui %0 : i1 to i32
    %c0_i32_0 = arith.constant 0 : i32
    %2 = arith.cmpi ne, %1, %c0_i32_0 : i32
    scf.if %2 {
      %cst_14 = arith.constant 0.000000e+00 : f32
      %12 = vector.broadcast %cst_14 : f32 to vector<8x32x128xf32>
      %c0_15 = arith.constant 0 : index
      %c0_16 = arith.constant 0 : index
      %c0_17 = arith.constant 0 : index
      %13 = vector.load %arg7[%c0_15, %c0_16, %c0_17] : memref<8x32x128xf32, #tpu.memory_space<vmem>>, vector<8x32x128xf32>
      tpu.vector_store %arg7[%c0_15, %c0_16, %c0_17], %12 {strides = array<i32>} : memref<8x32x128xf32, #tpu.memory_space<vmem>>, vector<8x32x128xf32>,
    } else {
    }
    %c0 = arith.constant 0 : index
    %c0_1 = arith.constant 0 : index
    %c0_2 = arith.constant 0 : index
    %3 = vector.load %arg7[%c0, %c0_1, %c0_2] : memref<8x32x128xf32, #tpu.memory_space<vmem>>, vector<8x32x128xf32>
    %c0_3 = arith.constant 0 : index
    %c0_4 = arith.constant 0 : index
    %c0_5 = arith.constant 0 : index
    %4 = vector.load %arg4[%c0_3, %c0_4, %c0_5] : memref<8x32x256xf32, #tpu.memory_space<vmem>>, vector<8x32x256xf32>
    %c0_6 = arith.constant 0 : index
    %c0_7 = arith.constant 0 : index
    %c0_8 = arith.constant 0 : index
    %5 = vector.load %arg5[%c0_6, %c0_7, %c0_8] : memref<8x128x256xf32, #tpu.memory_space<vmem>>, vector<8x128x256xf32>
    %cst = arith.constant dense<0.000000e+00> : vector<8x32x128xf32>
    %6 = tpu.matmul %4, %5, %cst {dimension_numbers = #tpu.dot_dimension_numbers<[2], [2], [1], [1], [0, 0, 0, 1, 1, 1], [0], [0]>} : vector<8x32x256xf32>, vector<8x128x256xf32>, vector<8x32x128xf32> -> vector<8x32x128xf32>
    %7 = arith.addf %3, %6 : vector<8x32x128xf32>
    %c0_9 = arith.constant 0 : index
    %c0_10 = arith.constant 0 : index
    %c0_11 = arith.constant 0 : index
    %8 = vector.load %arg7[%c0_9, %c0_10, %c0_11] : memref<8x32x128xf32, #tpu.memory_space<vmem>>, vector<8x32x128xf32>
    tpu.vector_store %arg7[%c0_9, %c0_10, %c0_11], %7 {strides = array<i32>} : memref<8x32x128xf32, #tpu.memory_space<vmem>>, vector<8x32x128xf32>,
    %c0_i32_12 = arith.constant 0 : i32
    %9 = arith.cmpi eq, %arg3, %c0_i32_12 : i32
    %10 = arith.extui %9 : i1 to i32
    %c0_i32_13 = arith.constant 0 : i32
    %11 = arith.cmpi ne, %10, %c0_i32_13 : i32
    scf.if %11 {
      %c0_14 = arith.constant 0 : index
      %c0_15 = arith.constant 0 : index
      %c0_16 = arith.constant 0 : index
      %12 = vector.load %arg7[%c0_14, %c0_15, %c0_16] : memref<8x32x128xf32, #tpu.memory_space<vmem>>, vector<8x32x128xf32>
      %c0_17 = arith.constant 0 : index
      %c0_18 = arith.constant 0 : index
      %13 = vector.load %arg6[%c0_17, %c0_18] : memref<8x128xf32, #tpu.memory_space<vmem>>, vector<8x128xf32>
      %14 = vector.shape_cast %13 : vector<8x128xf32> to vector<8x1x128xf32>
      %15 = vector.broadcast %14 : vector<8x1x128xf32> to vector<8x32x128xf32>
      %16 = arith.addf %12, %15 : vector<8x32x128xf32>
      %c0_19 = arith.constant 0 : index
      %c0_20 = arith.constant 0 : index
      %c0_21 = arith.constant 0 : index
      %17 = vector.load %arg7[%c0_19, %c0_20, %c0_21] : memref<8x32x128xf32, #tpu.memory_space<vmem>>, vector<8x32x128xf32>
      tpu.vector_store %arg7[%c0_19, %c0_20, %c0_21], %16 {strides = array<i32>} : memref<8x32x128xf32, #tpu.memory_space<vmem>>, vector<8x32x128xf32>,
    } else {
    }
    return
  }
  func.func @transform_0(%arg0: i32, %arg1: i32, %arg2: i32, %arg3: i32) -> (i32, i32, i32) {
    %c0_i32 = arith.constant 0 : i32
    return %arg0, %arg1, %arg3 : i32, i32, i32
  }
  func.func @transform_1(%arg0: i32, %arg1: i32, %arg2: i32, %arg3: i32) -> (i32, i32, i32) {
    %c0_i32 = arith.constant 0 : i32
    return %arg0, %arg2, %arg3 : i32, i32, i32
  }
  func.func @transform_2(%arg0: i32, %arg1: i32, %arg2: i32, %arg3: i32) -> (i32, i32) {
    %c0_i32 = arith.constant 0 : i32
    return %arg0, %arg2 : i32, i32
  }
  func.func @transform_3(%arg0: i32, %arg1: i32, %arg2: i32, %arg3: i32) -> (i32, i32, i32) {
    %c0_i32 = arith.constant 0 : i32
    return %arg0, %arg1, %arg2 : i32, i32, i32
  }
}

</mosaic_0001>

<bundles_post_ra>
// kernel: tpu_custom_call.1
= control target key start
LH: loop header
LB: loop body
LE: loop exit
PB: predicated region body
PF: predicated region fallthrough
CT: control target
= control target key end

     0   :  { %s3020_s0 = inlined_call_operand.hbm [shape: f32[16,32,256], index: 0, kind: input, shape index: {}]   ;;  %s3021_s1 = inlined_call_operand.hbm [shape: f32[16,128,256], index: 1, kind: input, shape index: {}]   ;;  %s3022_s2 = inlined_call_operand.hbm [shape: f32[16,128], index: 2, kind: input, shape index: {}]   ;;  %s3023_s3 = inlined_call_operand.hbm [shape: f32[16,32,128], index: 3, kind: output, shape index: {}]  }
   0x1   :  { %3034 = sst [smem:[#allocation17_spill]] %s3020_s0 }
   0x2   :  { %3035 = sst [smem:[#allocation18_spill]] %s3021_s1 }
   0x3   :  { %8 = vsyncpa [#allocation3], 0 }
   0x4   :  { %10 = vsyncpa [#allocation3 + $0x1], 0 }
   0x5   :  { %11 = vsyncpa [#allocation6], 0 }
   0x6   :  { %13 = vsyncpa [#allocation6 + $0x1], 0 }
   0x7   :  { %14 = vsyncpa [#allocation4], 0 }
   0x8   :  { %16 = vsyncpa [#allocation4 + $0x1], 0  ;;  %s2382_s12 = smov 0   ;;  %s2384_s13 = smov 0  }
   0x9   :  { %s2386_s14 = smov 0   ;;  %s2388_s15 = smov 0  }
   0xa   :  { %s2390_s16 = smov 0   ;;  %s2392_s17 = smov 0  }
   0xb LB: > { %3036 = sst [smem:[#allocation12_spill]] %s2339_s14  ;;  %s2413_s18 = sadd.s32 4294967295, %s2351_s17   ;;  %s2351_s17 = sphi %s2392_s17, %s22_s17   ;;  %s2347_s16 = sphi %s2390_s16, %s3066_s16   ;;  %s2343_s15 = sphi %s2388_s15, %s3065_s15   ;;  %s2339_s14 = sphi %s2386_s14, %s3061_s14   ;;  %s2335_s13 = sphi %s2384_s13, %s3064_s13   ;;  %s2331_s12 = sphi %s2382_s12, %s3063_s12  }
   0xc   : > { %3037 = sst [smem:[#allocation13_spill]] %s2351_s17  ;;  %s1810_s19 = sadd.s32 4294967294, %s2351_s17  }
   0xd   : > { %s48_s20 = sadd.s32 1, %s2347_s16  ;;  %s59_s21 = sadd.s32 1, %s2339_s14 }
   0xe   : > { %p50_p0 = scmp.ge.s32.totalorder %s48_s20, 2  ;;  %p66_p1 = scmp.ne.s32.totalorder %s2339_s14, %s2335_s13 }
   0xf   : > { %p67_p2 = scmp.eq.s32.totalorder %s2351_s17, 0  ;;  %p72_p3 = scmp.ne.s32.totalorder %s2335_s13, %s2331_s12 }
  0x10   : > { %s3068_s20 = smov (%p50_p0, %s48_s20), 0  ;;  %p73_p5 = scmp.eq.s32.totalorder %s2413_s18, 0 }
  0x11   : > { %3038 = sst [smem:[#allocation14_spill]] %s3068_s20  ;;  %p2425_p4 = por %p67_p2, %p66_p1 }
  0x12   : > { %s52_s23 = ssub.s32 %s2347_s16, %s3068_s20  ;;  %p158_p6 = scmp.eq.s32.totalorder %s2413_s18, 1 }
  0x13   : > { %p57_p7 = scmp.eq.s32.totalorder %s52_s23, 0  ;;  %p2433_p8 = por %p73_p5, %p72_p3 }
  0x14   : > { %p2437_p9 = por %p158_p6, %p66_p1  ;;  %p164_p10 = scmp.eq.s32.totalorder %s1810_s19, 1 }
  0x15   : > { %s3040_s24 = scalar_select %p2433_p8, 1, 0 }
  0x16   : > { %s3041_s25 = scalar_select %p2437_p9, 1, 0 }
  0x17   : > { %s2442_s26 = scalar_select %p57_p7, %s2339_s14, %s59_s21  }
  0x18   : > { %p2444_p11 = por %p164_p10, %p72_p3  ;;  %p2118_p13 = scmp.lt.s32.totalorder %s2351_s17, 2 }
  0x19   : > { %3042 = sst [smem:[#allocation15_spill]] %s2442_s26  ;;  %s2451_s28 = sand.u32 1, %s2339_s14  }
  0x1a   : > { %s3043_s27 = scalar_select %p2444_p11, 1, 0 }
  0x1b   : > { %p2455_p0 = pnand %p2118_p13, %p2425_p4  ;;  %s211_s30 = sand.u32 1, %s2351_s17  }
  0x1c   : > { %3044 = sst [smem:[#allocation16_spill]] %s3043_s27  ;;  %s1817_s4 = sshll.u32 %s2451_s28, 11 }
  0x1d   : > { %s3045_s29 = scalar_select %p2455_p0, 1, 0 }
  0x1e   : > { %s1837_s5 = sshll.u32 %s2347_s16, 15  ;;  %s215_s6 = scalar_lea.vmem [#allocation5], %s1817_s4 }
  0x1f   : > { %s228_s7 = sshll.u32 %s215_s6, 4  ;;  %s3046_s1 = sld [smem:[#allocation18_spill]]  ;;  %s2467_s7 = int_to_ptr.vmem [resolvable:$true] %s228_s7 }
  0x20   : > { %s2469_s11 = scalar_lea.sflag [#allocation6], %s211_s30  ;;  %p2475_p2 = pneg %p2455_p0 }
  0x25   : > { %s2465_s10 = scalar_lea.hbm %s3046_s1, %s1837_s5  ;;  %s2180_s4 = scalar_lea.hbm %s3046_s1, 65536 }
  0x26   : > { %s2175_s19 = scalar_lea.hbm %s2465_s10, 32768  ;;  %p2181_p5 = scmp.lt.u32.totalorder %s2465_s10, %s3046_s1 }
  0x27   : > { %p2176_p1 = scmp.ne.s32.totalorder %s2465_s10, %s2175_s19  ;;  %p2182_p6 = scmp.lt.u32.totalorder %s2180_s4, %s2175_s19 }
  0x28   : > { %p2184_p10 = scmp.lt.u32.totalorder %s2175_s19, %s2465_s10 }
  0x29   : > { %p2178_p3 = pnand %p2475_p2, %p2176_p1  ;;  %p2183_p7 = por %p2182_p6, %p2181_p5 }
  0x2b   : > { %p2179_p4 = pneg %p2178_p3  ;;  %p2185_p13 = por %p2184_p10, %p2183_p7 }
  0x2d   : > { %p2186_p12 = pnand %p2185_p13, %p2179_p4 }
  0x2f   : > { %2189 = shalt.err (!%p2186_p12)
}
  0x30   : > { %s2190_s30 = scalar_lea.vmem %s2467_s7, 32768  ;;  %s2353_s8 = smov [#allocation5]  }
  0x31   : > { %p2191_p1 = scmp.ne.s32.totalorder %s2467_s7, %s2190_s30  ;;  %s2195_s9 = sshll.u32 %s2353_s8, 4  ;;  %s2196_s9 = int_to_ptr.vmem [resolvable:$false] %s2195_s9 }
  0x32   : > { %s2197_s22 = scalar_lea.vmem %s2196_s9, 65536  ;;  %p2198_p9 = scmp.lt.s32.totalorder %s2467_s7, %s2196_s9 }
  0x33   : > { %p2193_p3 = pnand %p2191_p1, %p2475_p2  ;;  %p2199_p8 = scmp.lt.s32.totalorder %s2197_s22, %s2190_s30 }
  0x35   : > { %p2194_p11 = pneg %p2193_p3  ;;  %p2200_p5 = por %p2199_p8, %p2198_p9 }
  0x37   : > { %p2201_p6 = pnand %p2200_p5, %p2194_p11 }
  0x39   : > { %2204 = shalt.err (!%p2201_p6)
}
  0x3a   : > { %s3026_s19 = smov 256   ;;  %s3027_s23 = smov 16  }
  0x3b   : > { %2110 = dma.hbm_to_vmem [thread:$0]  (!%p2455_p0), %s2465_s10, 32768, %s2467_s7, %s2469_s11, %s3026_s19, %s3026_s19, %s3027_s23  }
  0x3c   : > { %p1823_p8 = scmp.ge.s32.totalorder %s2351_s17, 1  ;;  %p255_p9 = scmp.lt.s32.totalorder %s2351_s17, 3 }
  0x3d   : > { %s1813_s5 = sshll.u32 %s2451_s28, 9  ;;  %s1835_s6 = sshll.u32 %s2347_s16, 13 }
  0x3e   : > { %p2504_p11 = pnand %p1823_p8, %p255_p9  ;;  %s3049_s0 = sld [smem:[#allocation17_spill]] }
  0x3f   : > { %s188_s22 = scalar_lea.vmem [#allocation2], %s1813_s5  ;;  %s1821_s7 = sshll.u32 %s2451_s28, 3 }
  0x40   : > { %s3048_s4 = scalar_select %p2504_p11, 1, 0 }
  0x41   : > { %s201_s1 = sshll.u32 %s188_s22, 4  ;;  %s185_s10 = scalar_lea.sflag [#allocation3], %s2451_s28  ;;  %s2516_s1 = int_to_ptr.vmem [resolvable:$true] %s201_s1 }
  0x44   : > { %s2513_s9 = scalar_lea.hbm %s3049_s0, %s1835_s6  ;;  %s2210_s6 = scalar_lea.hbm %s3049_s0, 16384 }
  0x45   : > { %s2205_s19 = scalar_lea.hbm %s2513_s9, 8192  ;;  %p2211_p10 = scmp.lt.u32.totalorder %s2513_s9, %s3049_s0 }
  0x46   : > { %p2206_p12 = scmp.ne.s32.totalorder %s2513_s9, %s2205_s19  ;;  %p2212_p13 = scmp.lt.u32.totalorder %s2210_s6, %s2205_s19 }
  0x47   : > { %p2214_p3 = scmp.lt.u32.totalorder %s2205_s19, %s2513_s9 }
  0x48   : > { %p2208_p4 = pnand %p2206_p12, %p2475_p2  ;;  %p2213_p1 = por %p2212_p13, %p2211_p10 }
  0x4a   : > { %p2209_p7 = pneg %p2208_p4  ;;  %p2215_p5 = por %p2214_p3, %p2213_p1 }
  0x4c   : > { %p2216_p6 = pnand %p2215_p5, %p2209_p7 }
  0x4e   : > { %2219 = shalt.err (!%p2216_p6)
}
  0x4f   : > { %s2220_s5 = scalar_lea.vmem %s2516_s1, 8192  ;;  %s2356_s20 = smov [#allocation2]  }
  0x50   : > { %p2221_p8 = scmp.ne.s32.totalorder %s2516_s1, %s2220_s5  ;;  %s2225_s23 = sshll.u32 %s2356_s20, 4  ;;  %s2226_s23 = int_to_ptr.vmem [resolvable:$false] %s2225_s23 }
  0x51   : > { %s2227_s22 = scalar_lea.vmem %s2226_s23, 16384  ;;  %p2228_p4 = scmp.lt.s32.totalorder %s2516_s1, %s2226_s23 }
  0x52   : > { %p2223_p9 = pnand %p2221_p8, %p2475_p2  ;;  %p2229_p11 = scmp.lt.s32.totalorder %s2227_s22, %s2220_s5 }
  0x54   : > { %p2224_p12 = pneg %p2223_p9  ;;  %p2230_p10 = por %p2229_p11, %p2228_p4 }
  0x56   : > { %p2231_p13 = pnand %p2230_p10, %p2224_p12 }
  0x58   : > { %2234 = shalt.err (!%p2231_p13)
}
  0x59   : > { %s3050_s19 = smov 16   ;;  %s3051_s6 = smov 256  }
  0x5a   : > { %2107 = dma.hbm_to_vmem [thread:$0]  (!%p2455_p0), %s2513_s9, 8192, %s2516_s1, %s185_s10, %s3051_s6, %s3051_s6, %s3050_s19  }
  0x5b   : > { %s1822_s30 = sshll.u32 %s2347_s16, 7  ;;  %s242_s8 = scalar_lea.vmem [#allocation7], %s1821_s7 }
  0x5c   : > { %s250_s5 = sshll.u32 %s242_s8, 4  ;;  %s248_s22 = scalar_lea.hbm %s3022_s2, %s1822_s30  ;;  %s251_s5 = int_to_ptr.vmem [resolvable:$true] %s250_s5 }
  0x5d   : > { %s2235_s0 = scalar_lea.hbm %s248_s22, 128  ;;  %s2240_s17 = scalar_lea.hbm %s3022_s2, 256 }
  0x5e   : > { %p2236_p11 = scmp.ne.s32.totalorder %s248_s22, %s2235_s0  ;;  %p2241_p3 = scmp.lt.u32.totalorder %s248_s22, %s3022_s2 }
  0x5f   : > { %p2242_p5 = scmp.lt.u32.totalorder %s2240_s17, %s2235_s0  ;;  %p2244_p8 = scmp.lt.u32.totalorder %s2235_s0, %s248_s22 }
  0x60   : > { %p2238_p7 = pnand %p2236_p11, %p2475_p2 }
  0x61   : > { %p2243_p6 = por %p2242_p5, %p2241_p3 }
  0x62   : > { %p2239_p1 = pneg %p2238_p7 }
  0x63   : > { %p2245_p9 = por %p2244_p8, %p2243_p6 }
  0x65   : > { %p2246_p12 = pnand %p2245_p9, %p2239_p1 }
  0x67   : > { %2249 = shalt.err (!%p2246_p12)
}
  0x68   : > { %s2250_s28 = scalar_lea.vmem %s251_s5, 128  ;;  %s2357_s9 = smov [#allocation7]  }
  0x69   : > { %p2251_p4 = scmp.ne.s32.totalorder %s251_s5, %s2250_s28  ;;  %s2255_s7 = sshll.u32 %s2357_s9, 4  ;;  %s2256_s7 = int_to_ptr.vmem [resolvable:$false] %s2255_s7 }
  0x6a   : > { %s2257_s14 = scalar_lea.vmem %s2256_s7, 256  ;;  %p2258_p11 = scmp.lt.s32.totalorder %s251_s5, %s2256_s7 }
  0x6b   : > { %p2253_p10 = pnand %p2251_p4, %p2475_p2  ;;  %p2259_p7 = scmp.lt.s32.totalorder %s2257_s14, %s2250_s28 }
  0x6d   : > { %p2254_p13 = pneg %p2253_p10  ;;  %p2260_p0 = por %p2259_p7, %p2258_p11 }
  0x6f   : > { %p2261_p3 = pnand %p2260_p0, %p2254_p13 }
  0x71   : > { %2264 = shalt.err (!%p2261_p3)
}
  0x72   : > { %p3052_p5 = scmp.ne.s32.totalorder %s3045_s29, 0  ;;  %p3053_p1 = scmp.ne.s32.totalorder %s3048_s4, 0 }
  0x73   : > { %s2567_s0 = sand.u32 (!%p3053_p1), 1, %s2335_s13   ;;  %p3054_p2 = scmp.ne.s32.totalorder (!%p3053_p1), %s3040_s24, 0 }
  0x74   : > { %2113 = dma.hbm_to_vmem [thread:$0]  (!%p3052_p5), %s248_s22, 128, %s251_s5, %s2469_s11  }
  0x75   : > { %259 = sbr.rel (%p3053_p1) target bundleno = 630 (0x276), region = 32  ;;  %s1824_s17 = sshll.u32 (!%p3053_p1), %s2567_s0, 9 }
  0x76   : > { %s262_s26 = scalar_lea.sflag (!%p3053_p1), [#allocation3], %s2567_s0  ;;  %s2571_s27 = scalar_lea.vmem (!%p3053_p1), [#allocation2], %s1824_s17 }
  0x7c   : > { %2318 = dma.done.wait (%p3054_p2), %s262_s26, 8192  }
  0x7d   : > { %2320 = vsyncadd (%p3054_p2), %s262_s26, 4294959104  ;;  %s270_s29 = sand.u32 1, %s2413_s18   ;;  %s1825_s11 = sshll.u32 %s2567_s0, 11 }
  0x7e   : > { %s271_s21 = scalar_lea.sflag [#allocation6], %s270_s29  ;;  %s2579_s4 = scalar_lea.vmem [#allocation5], %s1825_s11 }
  0x7f   : > { %2322 = dma.done.wait (%p3054_p2), %s271_s21, 32896  }
  0x80   : > { %2324 = vsyncadd (%p3054_p2), %s271_s21, 4294934400  ;;  %v457_v0 = vld [vmem:[%s2579_s4 + $0x8] sm:$0xff]  ;;  %v459_v1 = vld [vmem:[%s2579_s4 + $0x18] sm:$0xff]  ;;  %s1826_s18 = sshll.u32 %s2567_s0, 3  ;;  %s1827_s10 = sshll.u32 %s2567_s0, 8 }
  0x81   : > { %v489_v2 = vld [vmem:[%s2579_s4 + $0x108] sm:$0xff]  ;;  %v1840_v3 = vpack.c.bf16 %v459_v1, %v457_v0  ;;  %v491_v4 = vld [vmem:[%s2579_s4 + $0x118] sm:$0xff]  ;;  %v456_v5 = vld [vmem:[%s2579_s4] sm:$0xff]  ;;  %s283_s24 = scalar_lea.vmem [#allocation7], %s1826_s18  ;;  %s2919_s19 = scalar_lea.vmem [#allocation8], %s1827_s10 }
  0x82   : > { %v458_v6 = vld [vmem:[%s2579_s4 + $0x10] sm:$0xff]  ;;  %v1872_v7 = vpack.c.bf16 %v491_v4, %v489_v2  ;;  %v488_v9 = vld [vmem:[%s2579_s4 + $0x100] sm:$0xff]  ;;  %v461_v11 = vld [vmem:[%s2579_s4 + $0x28] sm:$0xff]  ;;  %s1839_s6 = sshll.u32 %s2343_s15, 12  ;;  %s1664_s30 = sshll.u32 %s2919_s19, 4  ;;  %s2969_s30 = int_to_ptr.vmem [resolvable:$true] %s1664_s30 }
  0x83   : > { %v1842_v8 = vpack.c.bf16 %v458_v6, %v456_v5  ;;  %v490_v10 = vld [vmem:[%s2579_s4 + $0x110] sm:$0xff]  ;;  %1841 = vmatprep.subr.bf16.mxu0 %v1840_v3  ;;  %v463_v13 = vld [vmem:[%s2579_s4 + $0x38] sm:$0xff]  ;;  %v493_v14 = vld [vmem:[%s2579_s4 + $0x128] sm:$0xff]  ;;  %s2967_s20 = scalar_lea.hbm %s3023_s3, %s1839_s6  ;;  %s1647_s15 = scalar_lea.sflag [#allocation4], %s2567_s0 }
  0x84   : > { %v1874_v12 = vpack.c.bf16 %v490_v10, %v488_v9  ;;  %v495_v15 = vld [vmem:[%s2579_s4 + $0x138] sm:$0xff]  ;;  %1873 = vmatprep.subr.bf16.mxu1 %v1872_v7  ;;  %v1844_v16 = vpack.c.bf16 %v463_v13, %v461_v11  ;;  %v460_v18 = vld [vmem:[%s2579_s4 + $0x20] sm:$0xff]  ;;  %v462_v19 = vld [vmem:[%s2579_s4 + $0x30] sm:$0xff]  ;;  %s2265_s23 = scalar_lea.vmem %s2969_s30, 4096  ;;  %p3055_p6 = scmp.ne.s32.totalorder %s3041_s25, 0 }
  0x85   : > { %1843 = vmatpush1.bf16.xpose.msra.mxu0 %v1842_v8  ;;  %v1876_v17 = vpack.c.bf16 %v495_v15, %v493_v14  ;;  %v492_v20 = vld [vmem:[%s2579_s4 + $0x120] sm:$0xff]  ;;  %v494_v21 = vld [vmem:[%s2579_s4 + $0x130] sm:$0xff]  ;;  %v465_v22 = vld [vmem:[%s2579_s4 + $0x48] sm:$0xff]  ;;  %v1846_v26 = vpack.c.bf16 %v462_v19, %v460_v18  ;;  %p2266_p0 = scmp.ne.s32.totalorder %s2969_s30, %s2265_s23  ;;  %s2359_s22 = smov [#allocation8]  }
  0x86   : > { %1875 = vmatpush1.bf16.xpose.msra.mxu1 %v1874_v12  ;;  %1845 = vmatprep.subr.bf16.mxu0 %v1844_v16  ;;  %v467_v23 = vld [vmem:[%s2579_s4 + $0x58] sm:$0xff]  ;;  %v497_v24 = vld [vmem:[%s2579_s4 + $0x148] sm:$0xff]  ;;  %v1878_v27 = vpack.c.bf16 %v494_v21, %v492_v20  ;;  %v464_v30 = vld [vmem:[%s2579_s4 + $0x40] sm:$0xff]  ;;  %s2269_s1 = sshll.u32 %s2359_s22, 4  ;;  %s2270_s1 = int_to_ptr.vmem [resolvable:$false] %s2269_s1 }
  0x87   : > { %1877 = vmatprep.subr.bf16.mxu1 %v1876_v17  ;;  %v499_v25 = vld [vmem:[%s2579_s4 + $0x158] sm:$0xff]  ;;  %v1848_v28 = vpack.c.bf16 %v467_v23, %v465_v22  ;;  %v466_v31 = vld [vmem:[%s2579_s4 + $0x50] sm:$0xff]  ;;  %v496_v32 = vld [vmem:[%s2579_s4 + $0x140] sm:$0xff]  ;;  %p2267_p8 = pnand %p2266_p0, %p3055_p6  ;;  %s2271_s28 = scalar_lea.vmem %s2270_s1, 8192 }
  0x88   : > { %v1880_v29 = vpack.c.bf16 %v499_v25, %v497_v24  ;;  %v498_v33 = vld [vmem:[%s2579_s4 + $0x150] sm:$0xff]  ;;  %v469_v34 = vld [vmem:[%s2579_s4 + $0x68] sm:$0xff]  ;;  %v471_v35 = vld [vmem:[%s2579_s4 + $0x78] sm:$0xff]  ;;  %v1850_v38 = vpack.c.bf16 %v466_v31, %v464_v30  ;;  %p2272_p12 = scmp.lt.s32.totalorder %s2969_s30, %s2270_s1  ;;  %p2273_p4 = scmp.lt.s32.totalorder %s2271_s28, %s2265_s23 }
  0x89   : > { %v501_v36 = vld [vmem:[%s2579_s4 + $0x168] sm:$0xff]  ;;  %v503_v37 = vld [vmem:[%s2579_s4 + $0x178] sm:$0xff]  ;;  %v1882_v39 = vpack.c.bf16 %v498_v33, %v496_v32  ;;  %v1852_v40 = vpack.c.bf16 %v471_v35, %v469_v34  ;;  %v468_v42 = vld [vmem:[%s2579_s4 + $0x60] sm:$0xff]  ;;  %p2268_p9 = pneg %p2267_p8 }
  0x8a   : > { %v1884_v41 = vpack.c.bf16 %v503_v37, %v501_v36  ;;  %v470_v43 = vld [vmem:[%s2579_s4 + $0x70] sm:$0xff]  ;;  %v500_v44 = vld [vmem:[%s2579_s4 + $0x160] sm:$0xff]  ;;  %v393_v45 = vld [vmem:[%s2571_s27 + $0x8] sm:$0xff]  ;;  %p2274_p10 = por %p2273_p4, %p2272_p12 }
  0x8b   : > { %v401_v46 = vld [vmem:[%s2571_s27 + $0x48] sm:$0xff]  ;;  %v502_v47 = vld [vmem:[%s2579_s4 + $0x170] sm:$0xff]  ;;  %v475_v49 = vld [vmem:[%s2579_s4 + $0x98] sm:$0xff]  ;;  %776 = vmatprep.mubr.f32.mxu0 %v393_v45  ;;  %v1854_v52 = vpack.c.bf16 %v470_v43, %v468_v42 }
  0x8c   : > { %v473_v48 = vld [vmem:[%s2579_s4 + $0x88] sm:$0xff]  ;;  %v507_v51 = vld [vmem:[%s2579_s4 + $0x198] sm:$0xff]  ;;  %861 = vmatprep.mubr.f32.mxu1 %v401_v46  ;;  %v1886_v53 = vpack.c.bf16 %v502_v47, %v500_v44  ;;  %v472_v56 = vld [vmem:[%s2579_s4 + $0x80] sm:$0xff]  ;;  %p2275_p13 = pnand %p2274_p10, %p2268_p9 }
  0x8d   : > { %1847 = vmatpush1.bf16.xpose.msra.mxu0 %v1846_v26  ;;  %v505_v50 = vld [vmem:[%s2579_s4 + $0x188] sm:$0xff]  ;;  %v1856_v54 = vpack.c.bf16 %v475_v49, %v473_v48  ;;  %v474_v57 = vld [vmem:[%s2579_s4 + $0x90] sm:$0xff]  ;;  %v504_v58 = vld [vmem:[%s2579_s4 + $0x180] sm:$0xff] }
  0x8e   : > { %1879 = vmatpush1.bf16.xpose.msra.mxu1 %v1878_v27  ;;  %1849 = vmatprep.subr.bf16.mxu0 %v1848_v28  ;;  %v1888_v55 = vpack.c.bf16 %v507_v51, %v505_v50  ;;  %v506_v59 = vld [vmem:[%s2579_s4 + $0x190] sm:$0xff]  ;;  %v477_v60 = vld [vmem:[%s2579_s4 + $0xa8] sm:$0xff]  ;;  %v479_v61 = vld [vmem:[%s2579_s4 + $0xb8] sm:$0xff]  ;;  %v1858_v0 = vpack.c.bf16 %v474_v57, %v472_v56 }
  0x8f   : > { %1881 = vmatprep.subr.bf16.mxu1 %v1880_v29  ;;  %v509_v62 = vld [vmem:[%s2579_s4 + $0x1a8] sm:$0xff]  ;;  %v511_v63 = vld [vmem:[%s2579_s4 + $0x1b8] sm:$0xff]  ;;  %v1890_v1 = vpack.c.bf16 %v506_v59, %v504_v58  ;;  %v1860_v2 = vpack.c.bf16 %v479_v61, %v477_v60  ;;  %v476_v4 = vld [vmem:[%s2579_s4 + $0xa0] sm:$0xff] }
  0x90   : > { %v1892_v3 = vpack.c.bf16 %v511_v63, %v509_v62  ;;  %v478_v5 = vld [vmem:[%s2579_s4 + $0xb0] sm:$0xff]  ;;  %v508_v6 = vld [vmem:[%s2579_s4 + $0x1a0] sm:$0xff]  ;;  %v481_v8 = vld [vmem:[%s2579_s4 + $0xc8] sm:$0xff] }
  0x91   : > { %v510_v7 = vld [vmem:[%s2579_s4 + $0x1b0] sm:$0xff]  ;;  %v483_v9 = vld [vmem:[%s2579_s4 + $0xd8] sm:$0xff]  ;;  %v513_v10 = vld [vmem:[%s2579_s4 + $0x1c8] sm:$0xff]  ;;  %v1862_v12 = vpack.c.bf16 %v478_v5, %v476_v4 }
  0x92   : > { %v515_v11 = vld [vmem:[%s2579_s4 + $0x1d8] sm:$0xff]  ;;  %v1894_v13 = vpack.c.bf16 %v510_v7, %v508_v6  ;;  %v1864_v14 = vpack.c.bf16 %v483_v9, %v481_v8  ;;  %v480_v16 = vld [vmem:[%s2579_s4 + $0xc0] sm:$0xff]  ;;  %v482_v17 = vld [vmem:[%s2579_s4 + $0xd0] sm:$0xff] }
  0x93   : > { %v1896_v15 = vpack.c.bf16 %v515_v11, %v513_v10  ;;  %v512_v18 = vld [vmem:[%s2579_s4 + $0x1c0] sm:$0xff]  ;;  %v514_v19 = vld [vmem:[%s2579_s4 + $0x1d0] sm:$0xff]  ;;  %v485_v20 = vld [vmem:[%s2579_s4 + $0xe8] sm:$0xff]  ;;  %v1866_v24 = vpack.c.bf16 %v482_v17, %v480_v16 }
  0x94   : > { %v487_v21 = vld [vmem:[%s2579_s4 + $0xf8] sm:$0xff]  ;;  %v517_v22 = vld [vmem:[%s2579_s4 + $0x1e8] sm:$0xff]  ;;  %v1898_v25 = vpack.c.bf16 %v514_v19, %v512_v18  ;;  %v484_v28 = vld [vmem:[%s2579_s4 + $0xe0] sm:$0xff] }
  0x95   : > { %1851 = vmatpush1.bf16.xpose.msra.mxu0 %v1850_v38  ;;  %v519_v23 = vld [vmem:[%s2579_s4 + $0x1f8] sm:$0xff]  ;;  %v1868_v26 = vpack.c.bf16 %v487_v21, %v485_v20  ;;  %v486_v29 = vld [vmem:[%s2579_s4 + $0xf0] sm:$0xff]  ;;  %v516_v30 = vld [vmem:[%s2579_s4 + $0x1e0] sm:$0xff] }
  0x96   : > { %1883 = vmatpush1.bf16.xpose.msra.mxu1 %v1882_v39  ;;  %1853 = vmatprep.subr.bf16.mxu0 %v1852_v40  ;;  %v1900_v27 = vpack.c.bf16 %v519_v23, %v517_v22  ;;  %v518_v31 = vld [vmem:[%s2579_s4 + $0x1f0] sm:$0xff]  ;;  %v521_v32 = vld [vmem:[%s2579_s4 + $0x208] sm:$0xff]  ;;  %v523_v33 = vld [vmem:[%s2579_s4 + $0x218] sm:$0xff]  ;;  %v1870_v36 = vpack.c.bf16 %v486_v29, %v484_v28 }
  0x97   : > { %1885 = vmatprep.subr.bf16.mxu1 %v1884_v41  ;;  %v553_v34 = vld [vmem:[%s2579_s4 + $0x308] sm:$0xff]  ;;  %v555_v35 = vld [vmem:[%s2579_s4 + $0x318] sm:$0xff]  ;;  %v1902_v37 = vpack.c.bf16 %v518_v31, %v516_v30  ;;  %v1904_v38 = vpack.c.bf16 %v523_v33, %v521_v32  ;;  %v520_v40 = vld [vmem:[%s2579_s4 + $0x200] sm:$0xff] }
  0x98   : > { %v1936_v39 = vpack.c.bf16 %v555_v35, %v553_v34  ;;  %v522_v41 = vld [vmem:[%s2579_s4 + $0x210] sm:$0xff]  ;;  %v552_v42 = vld [vmem:[%s2579_s4 + $0x300] sm:$0xff]  ;;  %v525_v44 = vld [vmem:[%s2579_s4 + $0x228] sm:$0xff] }
  0x99   : > { %v554_v43 = vld [vmem:[%s2579_s4 + $0x310] sm:$0xff]  ;;  %v527_v45 = vld [vmem:[%s2579_s4 + $0x238] sm:$0xff]  ;;  %v557_v46 = vld [vmem:[%s2579_s4 + $0x328] sm:$0xff]  ;;  %v1906_v49 = vpack.c.bf16 %v522_v41, %v520_v40 }
  0x9a   : > { %v559_v47 = vld [vmem:[%s2579_s4 + $0x338] sm:$0xff]  ;;  %v392_v48 = vld [vmem:[%s2571_s27] sm:$0xff]  ;;  %v1938_v51 = vpack.c.bf16 %v554_v43, %v552_v42  ;;  %v394_v59 = vld [vmem:[%s2571_s27 + $0x10] sm:$0xff] }
  0x9b   : > { %v400_v50 = vld [vmem:[%s2571_s27 + $0x40] sm:$0xff]  ;;  %v395_v56 = vld [vmem:[%s2571_s27 + $0x18] sm:$0xff]  ;;  %v558_v60 = vld [vmem:[%s2579_s4 + $0x330] sm:$0xff] }
  0x9c   : > { %v556_v57 = vld [vmem:[%s2579_s4 + $0x320] sm:$0xff]  ;;  %v403_v58 = vld [vmem:[%s2571_s27 + $0x58] sm:$0xff]  ;;  %v402_v61 = vld [vmem:[%s2571_s27 + $0x50] sm:$0xff] }
  0x9d   : > { %1855 = vmatpush1.bf16.xpose.msra.mxu0 %v1854_v52  ;;  %v1908_v52 = vpack.c.bf16 %v527_v45, %v525_v44  ;;  %v397_v62 = vld [vmem:[%s2571_s27 + $0x28] sm:$0xff]  ;;  %v396_v5 = vld [vmem:[%s2571_s27 + $0x20] sm:$0xff]  ;;  %v1942_v6 = vpack.c.bf16 %v558_v60, %v556_v57  ;;  %v530_v11 = vld [vmem:[%s2579_s4 + $0x250] sm:$0xff] }
  0x9e   : > { %1887 = vmatpush1.bf16.xpose.msra.mxu1 %v1886_v53  ;;  %1857 = vmatprep.subr.bf16.mxu0 %v1856_v54  ;;  %v1940_v53 = vpack.c.bf16 %v559_v47, %v557_v46  ;;  %v524_v54 = vld [vmem:[%s2579_s4 + $0x220] sm:$0xff]  ;;  %v529_v63 = vld [vmem:[%s2579_s4 + $0x248] sm:$0xff]  ;;  %v562_v16 = vld [vmem:[%s2579_s4 + $0x350] sm:$0xff] }
  0x9f   : > { %1889 = vmatprep.subr.bf16.mxu1 %v1888_v55  ;;  %v526_v55 = vld [vmem:[%s2579_s4 + $0x230] sm:$0xff]  ;;  %v404_v8 = vld [vmem:[%s2571_s27 + $0x60] sm:$0xff]  ;;  %v409_v18 = vld [vmem:[%s2571_s27 + $0x88] sm:$0xff] }
  0xa0   : > { %v1910_v4 = vpack.c.bf16 %v526_v55, %v524_v54  ;;  %v528_v10 = vld [vmem:[%s2579_s4 + $0x240] sm:$0xff]  ;;  %v406_v17 = vld [vmem:[%s2571_s27 + $0x70] sm:$0xff]  ;;  %v533_v19 = vld [vmem:[%s2579_s4 + $0x268] sm:$0xff] }
  0xa1   : > { %v535_v20 = vld [vmem:[%s2579_s4 + $0x278] sm:$0xff]  ;;  %v417_v21 = vld [vmem:[%s2571_s27 + $0xc8] sm:$0xff]  ;;  %v532_v28 = vld [vmem:[%s2579_s4 + $0x260] sm:$0xff] }
  0xa2   : > { %v565_v22 = vld [vmem:[%s2579_s4 + $0x368] sm:$0xff]  ;;  %v567_v23 = vld [vmem:[%s2579_s4 + $0x378] sm:$0xff]  ;;  %v534_v29 = vld [vmem:[%s2579_s4 + $0x270] sm:$0xff] }
  0xa3   : > { %v564_v30 = vld [vmem:[%s2579_s4 + $0x360] sm:$0xff]  ;;  %v566_v31 = vld [vmem:[%s2579_s4 + $0x370] sm:$0xff]  ;;  %v537_v32 = vld [vmem:[%s2579_s4 + $0x288] sm:$0xff] }
  0xa4   : > { %v539_v33 = vld [vmem:[%s2579_s4 + $0x298] sm:$0xff]  ;;  %v569_v34 = vld [vmem:[%s2579_s4 + $0x388] sm:$0xff]  ;;  %v536_v40 = vld [vmem:[%s2579_s4 + $0x280] sm:$0xff] }
  0xa5   : > { %1859 = vmatpush1.bf16.xpose.msra.mxu0 %v1858_v0  ;;  %v531_v0 = vld [vmem:[%s2579_s4 + $0x258] sm:$0xff]  ;;  %v538_v41 = vld [vmem:[%s2579_s4 + $0x290] sm:$0xff]  ;;  %v568_v42 = vld [vmem:[%s2579_s4 + $0x380] sm:$0xff] }
  0xa6   : > { %1891 = vmatpush1.bf16.xpose.msra.mxu1 %v1890_v1  ;;  %1861 = vmatprep.subr.bf16.mxu0 %v1860_v2  ;;  %v405_v1 = vld [vmem:[%s2571_s27 + $0x68] sm:$0xff]  ;;  %v1912_v7 = vpack.c.bf16 %v531_v0, %v529_v63  ;;  %v571_v35 = vld [vmem:[%s2579_s4 + $0x398] sm:$0xff]  ;;  %v570_v43 = vld [vmem:[%s2579_s4 + $0x390] sm:$0xff] }
  0xa7   : > { %1893 = vmatprep.subr.bf16.mxu1 %v1892_v3  ;;  %v561_v2 = vld [vmem:[%s2579_s4 + $0x348] sm:$0xff]  ;;  %v563_v3 = vld [vmem:[%s2579_s4 + $0x358] sm:$0xff]  ;;  %v572_v54 = vld [vmem:[%s2579_s4 + $0x3a0] sm:$0xff] }
  0xa8   : > { %v1944_v9 = vpack.c.bf16 %v563_v3, %v561_v2  ;;  %v541_v44 = vld [vmem:[%s2579_s4 + $0x2a8] sm:$0xff]  ;;  %v543_v45 = vld [vmem:[%s2579_s4 + $0x2b8] sm:$0xff]  ;;  %v574_v55 = vld [vmem:[%s2579_s4 + $0x3b0] sm:$0xff] }
  0xa9   : > { %v573_v46 = vld [vmem:[%s2579_s4 + $0x3a8] sm:$0xff]  ;;  %v575_v47 = vld [vmem:[%s2579_s4 + $0x3b8] sm:$0xff]  ;;  %v544_v0 = vld [vmem:[%s2579_s4 + $0x2c0] sm:$0xff] }
  0xaa   : > { %v547_v57 = vld [vmem:[%s2579_s4 + $0x2d8] sm:$0xff]  ;;  %v576_v2 = vld [vmem:[%s2579_s4 + $0x3c0] sm:$0xff]  ;;  %v578_v3 = vld [vmem:[%s2579_s4 + $0x3d0] sm:$0xff] }
  0xad   : > { %1863 = vmatpush1.bf16.xpose.msra.mxu0 %v1862_v12  ;;  %v399_v12 = vld [vmem:[%s2571_s27 + $0x38] sm:$0xff] }
  0xae   : > { %1895 = vmatpush1.bf16.xpose.msra.mxu1 %v1894_v13  ;;  %1865 = vmatprep.subr.bf16.mxu0 %v1864_v14  ;;  %v560_v13 = vld [vmem:[%s2579_s4 + $0x340] sm:$0xff]  ;;  %v407_v14 = vld [vmem:[%s2571_s27 + $0x78] sm:$0xff] }
  0xaf   : > { %1897 = vmatprep.subr.bf16.mxu1 %v1896_v15  ;;  %v398_v15 = vld [vmem:[%s2571_s27 + $0x30] sm:$0xff] }
  0xb5   : > { %1867 = vmatpush1.bf16.xpose.msra.mxu0 %v1866_v24  ;;  %v1914_v24 = vpack.c.bf16 %v530_v11, %v528_v10 }
  0xb6   : > { %1899 = vmatpush1.bf16.xpose.msra.mxu1 %v1898_v25  ;;  %1869 = vmatprep.subr.bf16.mxu0 %v1868_v26  ;;  %v1946_v25 = vpack.c.bf16 %v562_v16, %v560_v13  ;;  %v1916_v26 = vpack.c.bf16 %v535_v20, %v533_v19  ;;  %v550_v13 = vld [vmem:[%s2579_s4 + $0x2f0] sm:$0xff]  ;;  %v585_v16 = vld [vmem:[%s2579_s4 + $0x408] sm:$0xff]  ;;  %v619_v19 = vld [vmem:[%s2579_s4 + $0x518] sm:$0xff] }
  0xb7   : > { %1901 = vmatprep.subr.bf16.mxu1 %v1900_v27  ;;  %v1948_v27 = vpack.c.bf16 %v567_v23, %v565_v22 }
  0xbd   : > { %1871 = vmatpush1.bf16.xpose.msra.mxu0 %v1870_v36  ;;  %v1918_v36 = vpack.c.bf16 %v534_v29, %v532_v28  ;;  %v589_v28 = vld [vmem:[%s2579_s4 + $0x428] sm:$0xff]  ;;  %v591_v29 = vld [vmem:[%s2579_s4 + $0x438] sm:$0xff] }
  0xbe   : > { %1903 = vmatpush1.bf16.xpose.msra.mxu1 %v1902_v37  ;;  %1905 = vmatprep.subr.bf16.mxu0 %v1904_v38  ;;  %v1950_v37 = vpack.c.bf16 %v566_v31, %v564_v30  ;;  %v1920_v38 = vpack.c.bf16 %v539_v33, %v537_v32  ;;  %v621_v30 = vld [vmem:[%s2579_s4 + $0x528] sm:$0xff]  ;;  %v623_v31 = vld [vmem:[%s2579_s4 + $0x538] sm:$0xff]  ;;  %v408_v32 = vld [vmem:[%s2571_s27 + $0x80] sm:$0xff] }
  0xbf   : > { %1937 = vmatprep.subr.bf16.mxu1 %v1936_v39  ;;  %v1952_v39 = vpack.c.bf16 %v571_v35, %v569_v34  ;;  %v416_v34 = vld [vmem:[%s2571_s27 + $0xc0] sm:$0xff] }
  0xc4   : > { %777 = vmatmul.mubr.f32.vlgmr.msra.gmra.mrb[0].mxu0 %v392_v48  ;;  %v1922_v48 = vpack.c.bf16 %v538_v41, %v536_v40  ;;  %v411_v40 = vld [vmem:[%s2571_s27 + $0x98] sm:$0xff]  ;;  %v620_v41 = vld [vmem:[%s2579_s4 + $0x520] sm:$0xff] }
  0xc5   : > { %862 = vmatmul.mubr.f32.vlgmr.msra.gmra.mrb[0].mxu1 %v400_v50  ;;  %1907 = vmatpush1.bf16.xpose.msra.mxu0 %v1906_v49  ;;  %v1954_v49 = vpack.c.bf16 %v570_v43, %v568_v42  ;;  %v1924_v50 = vpack.c.bf16 %v543_v45, %v541_v44  ;;  %v419_v42 = vld [vmem:[%s2571_s27 + $0xd8] sm:$0xff]  ;;  %v410_v43 = vld [vmem:[%s2571_s27 + $0x90] sm:$0xff] }
  0xc6   : > { %1939 = vmatpush1.bf16.xpose.msra.mxu1 %v1938_v51  ;;  %1909 = vmatprep.subr.bf16.mxu0 %v1908_v52  ;;  %v1956_v51 = vpack.c.bf16 %v575_v47, %v573_v46  ;;  %v540_v52 = vld [vmem:[%s2579_s4 + $0x2a0] sm:$0xff]  ;;  %v622_v44 = vld [vmem:[%s2579_s4 + $0x530] sm:$0xff]  ;;  %v413_v46 = vld [vmem:[%s2571_s27 + $0xa8] sm:$0xff] }
  0xc7   : > { %1941 = vmatprep.subr.bf16.mxu1 %v1940_v53  ;;  %781 = vmatprep.mubr.f32.mxu0 %v395_v56  ;;  %v542_v53 = vld [vmem:[%s2579_s4 + $0x2b0] sm:$0xff]  ;;  %v545_v56 = vld [vmem:[%s2579_s4 + $0x2c8] sm:$0xff] }
  0xc8   : > { %866 = vmatprep.mubr.f32.mxu1 %v403_v58  ;;  %782 = vmatmul.mubr.f32.gmra.mrb[2].mxu0 %v394_v59  ;;  %v577_v58 = vld [vmem:[%s2579_s4 + $0x3c8] sm:$0xff]  ;;  %v579_v59 = vld [vmem:[%s2579_s4 + $0x3d8] sm:$0xff]  ;;  %v1926_v60 = vpack.c.bf16 %v542_v53, %v540_v52  ;;  %v418_v45 = vld [vmem:[%s2571_s27 + $0xd0] sm:$0xff] }
  0xc9   : > { %867 = vmatmul.mubr.f32.gmra.mrb[2].mxu1 %v402_v61  ;;  %786 = vmatprep.mubr.f32.mxu0 %v397_v62  ;;  %v1958_v61 = vpack.c.bf16 %v574_v55, %v572_v54  ;;  %v1928_v62 = vpack.c.bf16 %v547_v57, %v545_v56  ;;  %v1960_v63 = vpack.c.bf16 %v579_v59, %v577_v58  ;;  %v593_v47 = vld [vmem:[%s2579_s4 + $0x448] sm:$0xff]  ;;  %v412_v53 = vld [vmem:[%s2571_s27 + $0xa0] sm:$0xff]  ;;  %v594_v59 = vld [vmem:[%s2579_s4 + $0x450] sm:$0xff] }
  0xca   : > { %871 = vmatprep.mubr.f32.mxu1 %v405_v1  ;;  %v546_v1 = vld [vmem:[%s2579_s4 + $0x2d0] sm:$0xff]  ;;  %v2006_v54 = vpack.c.bf16 %v622_v44, %v620_v41  ;;  %v420_v56 = vld [vmem:[%s2571_s27 + $0xe0] sm:$0xff]  ;;  %v611_v41 = vld [vmem:[%s2579_s4 + $0x4d8] sm:$0xff] }
  0xcb   : > { %v592_v58 = vld [vmem:[%s2579_s4 + $0x440] sm:$0xff] }
  0xcc   : > { %787 = vmatmul.mubr.f32.gmra.mrb[4].mxu0 %v396_v5  ;;  %v551_v5 = vld [vmem:[%s2579_s4 + $0x2f8] sm:$0xff] }
  0xcd   : > { %1911 = vmatpush1.bf16.xpose.msra.mxu0 %v1910_v4  ;;  %872 = vmatmul.mubr.f32.gmra.mrb[4].mxu1 %v404_v8  ;;  %v549_v4 = vld [vmem:[%s2579_s4 + $0x2e8] sm:$0xff]  ;;  %v1930_v8 = vpack.c.bf16 %v546_v1, %v544_v0  ;;  %v626_v0 = vld [vmem:[%s2579_s4 + $0x550] sm:$0xff] }
  0xce   : > { %1943 = vmatpush1.bf16.xpose.msra.mxu1 %v1942_v6  ;;  %1913 = vmatprep.subr.bf16.mxu0 %v1912_v7  ;;  %v581_v6 = vld [vmem:[%s2579_s4 + $0x3e8] sm:$0xff]  ;;  %v583_v7 = vld [vmem:[%s2579_s4 + $0x3f8] sm:$0xff]  ;;  %v1932_v10 = vpack.c.bf16 %v551_v5, %v549_v4  ;;  %v422_v1 = vld [vmem:[%s2571_s27 + $0xf0] sm:$0xff] }
  0xcf   : > { %1945 = vmatprep.subr.bf16.mxu1 %v1944_v9  ;;  %791 = vmatprep.mubr.f32.mxu0 %v399_v12  ;;  %v1962_v9 = vpack.c.bf16 %v578_v3, %v576_v2  ;;  %v1964_v11 = vpack.c.bf16 %v583_v7, %v581_v6  ;;  %v548_v12 = vld [vmem:[%s2579_s4 + $0x2e0] sm:$0xff]  ;;  %v425_v2 = vld [vmem:[%s2571_s27 + $0x108] sm:$0xff]  ;;  %v599_v4 = vld [vmem:[%s2579_s4 + $0x478] sm:$0xff] }
  0xd0   : > { %876 = vmatprep.mubr.f32.mxu1 %v407_v14  ;;  %792 = vmatmul.mubr.f32.gmra.mrb[6].mxu0 %v398_v15  ;;  %v580_v14 = vld [vmem:[%s2579_s4 + $0x3e0] sm:$0xff]  ;;  %v582_v15 = vld [vmem:[%s2579_s4 + $0x3f0] sm:$0xff]  ;;  %v1934_v20 = vpack.c.bf16 %v550_v13, %v548_v12  ;;  %v597_v3 = vld [vmem:[%s2579_s4 + $0x468] sm:$0xff] }
  0xd1   : > { %877 = vmatmul.mubr.f32.gmra.mrb[6].mxu1 %v406_v17  ;;  %946 = vmatprep.mubr.f32.mxu0 %v409_v18  ;;  %v587_v17 = vld [vmem:[%s2579_s4 + $0x418] sm:$0xff]  ;;  %v617_v18 = vld [vmem:[%s2579_s4 + $0x508] sm:$0xff]  ;;  %v596_v12 = vld [vmem:[%s2579_s4 + $0x460] sm:$0xff] }
  0xd2   : > { %1031 = vmatprep.mubr.f32.mxu1 %v417_v21  ;;  %v1966_v21 = vpack.c.bf16 %v582_v15, %v580_v14  ;;  %v1968_v22 = vpack.c.bf16 %v587_v17, %v585_v16  ;;  %v2000_v23 = vpack.c.bf16 %v619_v19, %v617_v18  ;;  %v433_v5 = vld [vmem:[%s2571_s27 + $0x148] sm:$0xff]  ;;  %v631_v7 = vld [vmem:[%s2579_s4 + $0x578] sm:$0xff]  ;;  %v598_v13 = vld [vmem:[%s2579_s4 + $0x470] sm:$0xff] }
  0xd3   : > { %v629_v6 = vld [vmem:[%s2579_s4 + $0x568] sm:$0xff]  ;;  %v628_v14 = vld [vmem:[%s2579_s4 + $0x560] sm:$0xff]  ;;  %v630_v15 = vld [vmem:[%s2579_s4 + $0x570] sm:$0xff] }
  0xd4   : > { %v601_v16 = vld [vmem:[%s2579_s4 + $0x488] sm:$0xff]  ;;  %v603_v17 = vld [vmem:[%s2579_s4 + $0x498] sm:$0xff] }
  0xd5   : > { %1915 = vmatpush1.bf16.xpose.msra.mxu0 %v1914_v24  ;;  %v584_v24 = vld [vmem:[%s2579_s4 + $0x400] sm:$0xff]  ;;  %v633_v18 = vld [vmem:[%s2579_s4 + $0x588] sm:$0xff]  ;;  %v635_v19 = vld [vmem:[%s2579_s4 + $0x598] sm:$0xff] }
  0xd6   : > { %1947 = vmatpush1.bf16.xpose.msra.mxu1 %v1946_v25  ;;  %1917 = vmatprep.subr.bf16.mxu0 %v1916_v26  ;;  %v586_v25 = vld [vmem:[%s2579_s4 + $0x410] sm:$0xff]  ;;  %v616_v26 = vld [vmem:[%s2579_s4 + $0x500] sm:$0xff] }
  0xd7   : > { %1949 = vmatprep.subr.bf16.mxu1 %v1948_v27  ;;  %v618_v27 = vld [vmem:[%s2579_s4 + $0x510] sm:$0xff]  ;;  %v1970_v33 = vpack.c.bf16 %v586_v25, %v584_v24  ;;  %v600_v24 = vld [vmem:[%s2579_s4 + $0x480] sm:$0xff] }
  0xd8   : > { %v2002_v35 = vpack.c.bf16 %v618_v27, %v616_v26  ;;  %v602_v25 = vld [vmem:[%s2579_s4 + $0x490] sm:$0xff]  ;;  %v632_v26 = vld [vmem:[%s2579_s4 + $0x580] sm:$0xff] }
  0xd9   : > { %v634_v27 = vld [vmem:[%s2579_s4 + $0x590] sm:$0xff] }
  0xdd   : > { %1919 = vmatpush1.bf16.xpose.msra.mxu0 %v1918_v36  ;;  %v1972_v36 = vpack.c.bf16 %v591_v29, %v589_v28  ;;  %v605_v28 = vld [vmem:[%s2579_s4 + $0x4a8] sm:$0xff]  ;;  %v607_v29 = vld [vmem:[%s2579_s4 + $0x4b8] sm:$0xff] }
  0xde   : > { %1951 = vmatpush1.bf16.xpose.msra.mxu1 %v1950_v37  ;;  %1921 = vmatprep.subr.bf16.mxu0 %v1920_v38  ;;  %v2004_v37 = vpack.c.bf16 %v623_v31, %v621_v30  ;;  %v588_v38 = vld [vmem:[%s2579_s4 + $0x420] sm:$0xff]  ;;  %v637_v30 = vld [vmem:[%s2579_s4 + $0x5a8] sm:$0xff]  ;;  %v639_v31 = vld [vmem:[%s2579_s4 + $0x5b8] sm:$0xff] }
  0xdf   : > { %1953 = vmatprep.subr.bf16.mxu1 %v1952_v39  ;;  %v590_v39 = vld [vmem:[%s2579_s4 + $0x430] sm:$0xff] }
  0xe0   : > { %v1974_v52 = vpack.c.bf16 %v590_v39, %v588_v38  ;;  %v636_v38 = vld [vmem:[%s2579_s4 + $0x5a0] sm:$0xff]  ;;  %v638_v39 = vld [vmem:[%s2579_s4 + $0x5b0] sm:$0xff] }
  0xe5   : > { %1923 = vmatpush1.bf16.xpose.msra.mxu0 %v1922_v48  ;;  %v595_v48 = vld [vmem:[%s2579_s4 + $0x458] sm:$0xff] }
  0xe6   : > { %1955 = vmatpush1.bf16.xpose.msra.mxu1 %v1954_v49  ;;  %1925 = vmatprep.subr.bf16.mxu0 %v1924_v50  ;;  %v421_v49 = vld [vmem:[%s2571_s27 + $0xe8] sm:$0xff]  ;;  %v1976_v55 = vpack.c.bf16 %v595_v48, %v593_v47  ;;  %v608_v48 = vld [vmem:[%s2579_s4 + $0x4c0] sm:$0xff] }
  0xe7   : > { %1957 = vmatprep.subr.bf16.mxu1 %v1956_v51  ;;  %v625_v50 = vld [vmem:[%s2579_s4 + $0x548] sm:$0xff]  ;;  %v627_v51 = vld [vmem:[%s2579_s4 + $0x558] sm:$0xff] }
  0xe8   : > { %v2008_v57 = vpack.c.bf16 %v627_v51, %v625_v50  ;;  %v640_v50 = vld [vmem:[%s2579_s4 + $0x5c0] sm:$0xff]  ;;  %v642_v51 = vld [vmem:[%s2579_s4 + $0x5d0] sm:$0xff] }
  0xed   : > { %1927 = vmatpush1.bf16.xpose.msra.mxu0 %v1926_v60  ;;  %v415_v60 = vld [vmem:[%s2571_s27 + $0xb8] sm:$0xff] }
  0xee   : > { %1959 = vmatpush1.bf16.xpose.msra.mxu1 %v1958_v61  ;;  %1929 = vmatprep.subr.bf16.mxu0 %v1928_v62  ;;  %v624_v61 = vld [vmem:[%s2579_s4 + $0x540] sm:$0xff]  ;;  %v423_v62 = vld [vmem:[%s2571_s27 + $0xf8] sm:$0xff] }
  0xef   : > { %1961 = vmatprep.subr.bf16.mxu1 %v1960_v63  ;;  %v414_v63 = vld [vmem:[%s2571_s27 + $0xb0] sm:$0xff] }
  0xf5   : > { %1931 = vmatpush1.bf16.xpose.msra.mxu0 %v1930_v8  ;;  %v1978_v8 = vpack.c.bf16 %v594_v59, %v592_v58 }
  0xf6   : > { %1963 = vmatpush1.bf16.xpose.msra.mxu1 %v1962_v9  ;;  %1933 = vmatprep.subr.bf16.mxu0 %v1932_v10  ;;  %v2010_v9 = vpack.c.bf16 %v626_v0, %v624_v61  ;;  %v1980_v10 = vpack.c.bf16 %v599_v4, %v597_v3  ;;  %v614_v61 = vld [vmem:[%s2579_s4 + $0x4f0] sm:$0xff]  ;;  %v649_v0 = vld [vmem:[%s2579_s4 + $0x608] sm:$0xff]  ;;  %v683_v3 = vld [vmem:[%s2579_s4 + $0x718] sm:$0xff] }
  0xf7   : > { %1965 = vmatprep.subr.bf16.mxu1 %v1964_v11  ;;  %v2012_v11 = vpack.c.bf16 %v631_v7, %v629_v6 }
  0xfd   : > { %1935 = vmatpush1.bf16.xpose.msra.mxu0 %v1934_v20  ;;  %v1982_v20 = vpack.c.bf16 %v598_v13, %v596_v12  ;;  %v653_v12 = vld [vmem:[%s2579_s4 + $0x628] sm:$0xff]  ;;  %v655_v13 = vld [vmem:[%s2579_s4 + $0x638] sm:$0xff] }
  0xfe   : > { %1967 = vmatpush1.bf16.xpose.msra.mxu1 %v1966_v21  ;;  %1969 = vmatprep.subr.bf16.mxu0 %v1968_v22  ;;  %v2014_v21 = vpack.c.bf16 %v630_v15, %v628_v14  ;;  %v1984_v22 = vpack.c.bf16 %v603_v17, %v601_v16  ;;  %v685_v14 = vld [vmem:[%s2579_s4 + $0x728] sm:$0xff]  ;;  %v687_v15 = vld [vmem:[%s2579_s4 + $0x738] sm:$0xff]  ;;  %v424_v16 = vld [vmem:[%s2571_s27 + $0x100] sm:$0xff] }
  0xff   : > { %2001 = vmatprep.subr.bf16.mxu1 %v2000_v23  ;;  %v2016_v23 = vpack.c.bf16 %v635_v19, %v633_v18  ;;  %v432_v18 = vld [vmem:[%s2571_s27 + $0x140] sm:$0xff] }
 0x104   : > { %947 = vmatmul.mubr.f32.vlgmr.msra.gmra.mrb[8].mxu0 %v408_v32  ;;  %v1986_v32 = vpack.c.bf16 %v602_v25, %v600_v24  ;;  %v427_v24 = vld [vmem:[%s2571_s27 + $0x118] sm:$0xff]  ;;  %v684_v25 = vld [vmem:[%s2579_s4 + $0x720] sm:$0xff] }
 0x105   : > { %1032 = vmatmul.mubr.f32.vlgmr.msra.gmra.mrb[8].mxu1 %v416_v34  ;;  %1971 = vmatpush1.bf16.xpose.msra.mxu0 %v1970_v33  ;;  %v2018_v33 = vpack.c.bf16 %v634_v27, %v632_v26  ;;  %v1988_v34 = vpack.c.bf16 %v607_v29, %v605_v28  ;;  %v435_v26 = vld [vmem:[%s2571_s27 + $0x158] sm:$0xff]  ;;  %v426_v27 = vld [vmem:[%s2571_s27 + $0x110] sm:$0xff] }
 0x106   : > { %2003 = vmatpush1.bf16.xpose.msra.mxu1 %v2002_v35  ;;  %1973 = vmatprep.subr.bf16.mxu0 %v1972_v36  ;;  %v2020_v35 = vpack.c.bf16 %v639_v31, %v637_v30  ;;  %v604_v36 = vld [vmem:[%s2579_s4 + $0x4a0] sm:$0xff]  ;;  %v686_v28 = vld [vmem:[%s2579_s4 + $0x730] sm:$0xff]  ;;  %v429_v30 = vld [vmem:[%s2571_s27 + $0x128] sm:$0xff] }
 0x107   : > { %2005 = vmatprep.subr.bf16.mxu1 %v2004_v37  ;;  %951 = vmatprep.mubr.f32.mxu0 %v411_v40  ;;  %v606_v37 = vld [vmem:[%s2579_s4 + $0x4b0] sm:$0xff]  ;;  %v609_v40 = vld [vmem:[%s2579_s4 + $0x4c8] sm:$0xff] }
 0x108   : > { %1036 = vmatprep.mubr.f32.mxu1 %v419_v42  ;;  %952 = vmatmul.mubr.f32.gmra.mrb[10].mxu0 %v410_v43  ;;  %v641_v42 = vld [vmem:[%s2579_s4 + $0x5c8] sm:$0xff]  ;;  %v643_v43 = vld [vmem:[%s2579_s4 + $0x5d8] sm:$0xff]  ;;  %v1990_v44 = vpack.c.bf16 %v606_v37, %v604_v36  ;;  %v434_v29 = vld [vmem:[%s2571_s27 + $0x150] sm:$0xff] }
 0x109   : > { %1037 = vmatmul.mubr.f32.gmra.mrb[10].mxu1 %v418_v45  ;;  %956 = vmatprep.mubr.f32.mxu0 %v413_v46  ;;  %v2022_v45 = vpack.c.bf16 %v638_v39, %v636_v38  ;;  %v1992_v46 = vpack.c.bf16 %v611_v41, %v609_v40  ;;  %v2024_v47 = vpack.c.bf16 %v643_v43, %v641_v42  ;;  %v657_v31 = vld [vmem:[%s2579_s4 + $0x648] sm:$0xff]  ;;  %v428_v37 = vld [vmem:[%s2571_s27 + $0x120] sm:$0xff]  ;;  %v658_v43 = vld [vmem:[%s2579_s4 + $0x650] sm:$0xff] }
 0x10a   : > { %1041 = vmatprep.mubr.f32.mxu1 %v421_v49  ;;  %v610_v49 = vld [vmem:[%s2579_s4 + $0x4d0] sm:$0xff]  ;;  %v2070_v38 = vpack.c.bf16 %v686_v28, %v684_v25  ;;  %v436_v40 = vld [vmem:[%s2571_s27 + $0x160] sm:$0xff]  ;;  %v675_v25 = vld [vmem:[%s2579_s4 + $0x6d8] sm:$0xff] }
 0x10b   : > { %v656_v42 = vld [vmem:[%s2579_s4 + $0x640] sm:$0xff] }
 0x10c   : > { %957 = vmatmul.mubr.f32.gmra.mrb[12].mxu0 %v412_v53  ;;  %v615_v53 = vld [vmem:[%s2579_s4 + $0x4f8] sm:$0xff] }
 0x10d   : > { %1975 = vmatpush1.bf16.xpose.msra.mxu0 %v1974_v52  ;;  %1042 = vmatmul.mubr.f32.gmra.mrb[12].mxu1 %v420_v56  ;;  %v613_v52 = vld [vmem:[%s2579_s4 + $0x4e8] sm:$0xff]  ;;  %v1994_v56 = vpack.c.bf16 %v610_v49, %v608_v48  ;;  %v690_v48 = vld [vmem:[%s2579_s4 + $0x750] sm:$0xff] }
 0x10e   : > { %2007 = vmatpush1.bf16.xpose.msra.mxu1 %v2006_v54  ;;  %1977 = vmatprep.subr.bf16.mxu0 %v1976_v55  ;;  %v645_v54 = vld [vmem:[%s2579_s4 + $0x5e8] sm:$0xff]  ;;  %v647_v55 = vld [vmem:[%s2579_s4 + $0x5f8] sm:$0xff]  ;;  %v1996_v58 = vpack.c.bf16 %v615_v53, %v613_v52  ;;  %v438_v49 = vld [vmem:[%s2571_s27 + $0x170] sm:$0xff] }
 0x10f   : > { %2009 = vmatprep.subr.bf16.mxu1 %v2008_v57  ;;  %961 = vmatprep.mubr.f32.mxu0 %v415_v60  ;;  %v2026_v57 = vpack.c.bf16 %v642_v51, %v640_v50  ;;  %v2028_v59 = vpack.c.bf16 %v647_v55, %v645_v54  ;;  %v612_v60 = vld [vmem:[%s2579_s4 + $0x4e0] sm:$0xff]  ;;  %v441_v50 = vld [vmem:[%s2571_s27 + $0x188] sm:$0xff]  ;;  %v663_v52 = vld [vmem:[%s2579_s4 + $0x678] sm:$0xff] }
 0x110   : > { %1046 = vmatprep.mubr.f32.mxu1 %v423_v62  ;;  %962 = vmatmul.mubr.f32.gmra.mrb[14].mxu0 %v414_v63  ;;  %v644_v62 = vld [vmem:[%s2579_s4 + $0x5e0] sm:$0xff]  ;;  %v646_v63 = vld [vmem:[%s2579_s4 + $0x5f0] sm:$0xff]  ;;  %v1998_v4 = vpack.c.bf16 %v614_v61, %v612_v60  ;;  %v661_v51 = vld [vmem:[%s2579_s4 + $0x668] sm:$0xff] }
 0x111   : > { %1047 = vmatmul.mubr.f32.gmra.mrb[14].mxu1 %v422_v1  ;;  %1116 = vmatprep.mubr.f32.mxu0 %v425_v2  ;;  %v651_v1 = vld [vmem:[%s2579_s4 + $0x618] sm:$0xff]  ;;  %v681_v2 = vld [vmem:[%s2579_s4 + $0x708] sm:$0xff]  ;;  %v660_v60 = vld [vmem:[%s2579_s4 + $0x660] sm:$0xff] }
 0x112   : > { %1201 = vmatprep.mubr.f32.mxu1 %v433_v5  ;;  %v2030_v5 = vpack.c.bf16 %v646_v63, %v644_v62  ;;  %v2032_v6 = vpack.c.bf16 %v651_v1, %v649_v0  ;;  %v2064_v7 = vpack.c.bf16 %v683_v3, %v681_v2  ;;  %v449_v53 = vld [vmem:[%s2571_s27 + $0x1c8] sm:$0xff]  ;;  %v695_v55 = vld [vmem:[%s2579_s4 + $0x778] sm:$0xff]  ;;  %v662_v61 = vld [vmem:[%s2579_s4 + $0x670] sm:$0xff] }
 0x113   : > { %v693_v54 = vld [vmem:[%s2579_s4 + $0x768] sm:$0xff]  ;;  %v692_v62 = vld [vmem:[%s2579_s4 + $0x760] sm:$0xff]  ;;  %v694_v63 = vld [vmem:[%s2579_s4 + $0x770] sm:$0xff] }
 0x114   : > { %v665_v0 = vld [vmem:[%s2579_s4 + $0x688] sm:$0xff]  ;;  %v667_v1 = vld [vmem:[%s2579_s4 + $0x698] sm:$0xff] }
 0x115   : > { %1979 = vmatpush1.bf16.xpose.msra.mxu0 %v1978_v8  ;;  %v648_v8 = vld [vmem:[%s2579_s4 + $0x600] sm:$0xff]  ;;  %v697_v2 = vld [vmem:[%s2579_s4 + $0x788] sm:$0xff]  ;;  %v699_v3 = vld [vmem:[%s2579_s4 + $0x798] sm:$0xff] }
 0x116   : > { %2011 = vmatpush1.bf16.xpose.msra.mxu1 %v2010_v9  ;;  %1981 = vmatprep.subr.bf16.mxu0 %v1980_v10  ;;  %v650_v9 = vld [vmem:[%s2579_s4 + $0x610] sm:$0xff]  ;;  %v680_v10 = vld [vmem:[%s2579_s4 + $0x700] sm:$0xff] }
 0x117   : > { %2013 = vmatprep.subr.bf16.mxu1 %v2012_v11  ;;  %v682_v11 = vld [vmem:[%s2579_s4 + $0x710] sm:$0xff]  ;;  %v2034_v17 = vpack.c.bf16 %v650_v9, %v648_v8  ;;  %v664_v8 = vld [vmem:[%s2579_s4 + $0x680] sm:$0xff] }
 0x118   : > { %v2066_v19 = vpack.c.bf16 %v682_v11, %v680_v10  ;;  %v666_v9 = vld [vmem:[%s2579_s4 + $0x690] sm:$0xff]  ;;  %v696_v10 = vld [vmem:[%s2579_s4 + $0x780] sm:$0xff] }
 0x119   : > { %v698_v11 = vld [vmem:[%s2579_s4 + $0x790] sm:$0xff] }
 0x11d   : > { %1983 = vmatpush1.bf16.xpose.msra.mxu0 %v1982_v20  ;;  %v2036_v20 = vpack.c.bf16 %v655_v13, %v653_v12  ;;  %v669_v12 = vld [vmem:[%s2579_s4 + $0x6a8] sm:$0xff]  ;;  %v671_v13 = vld [vmem:[%s2579_s4 + $0x6b8] sm:$0xff] }
 0x11e   : > { %2015 = vmatpush1.bf16.xpose.msra.mxu1 %v2014_v21  ;;  %1985 = vmatprep.subr.bf16.mxu0 %v1984_v22  ;;  %v2068_v21 = vpack.c.bf16 %v687_v15, %v685_v14  ;;  %v652_v22 = vld [vmem:[%s2579_s4 + $0x620] sm:$0xff]  ;;  %v701_v14 = vld [vmem:[%s2579_s4 + $0x7a8] sm:$0xff]  ;;  %v703_v15 = vld [vmem:[%s2579_s4 + $0x7b8] sm:$0xff] }
 0x11f   : > { %2017 = vmatprep.subr.bf16.mxu1 %v2016_v23  ;;  %v654_v23 = vld [vmem:[%s2579_s4 + $0x630] sm:$0xff] }
 0x120   : > { %v2038_v36 = vpack.c.bf16 %v654_v23, %v652_v22  ;;  %v700_v22 = vld [vmem:[%s2579_s4 + $0x7a0] sm:$0xff]  ;;  %v702_v23 = vld [vmem:[%s2579_s4 + $0x7b0] sm:$0xff] }
 0x125   : > { %1987 = vmatpush1.bf16.xpose.msra.mxu0 %v1986_v32  ;;  %v659_v32 = vld [vmem:[%s2579_s4 + $0x658] sm:$0xff] }
 0x126   : > { %2019 = vmatpush1.bf16.xpose.msra.mxu1 %v2018_v33  ;;  %1989 = vmatprep.subr.bf16.mxu0 %v1988_v34  ;;  %v437_v33 = vld [vmem:[%s2571_s27 + $0x168] sm:$0xff]  ;;  %v2040_v39 = vpack.c.bf16 %v659_v32, %v657_v31  ;;  %v672_v32 = vld [vmem:[%s2579_s4 + $0x6c0] sm:$0xff] }
 0x127   : > { %2021 = vmatprep.subr.bf16.mxu1 %v2020_v35  ;;  %v689_v34 = vld [vmem:[%s2579_s4 + $0x748] sm:$0xff]  ;;  %v691_v35 = vld [vmem:[%s2579_s4 + $0x758] sm:$0xff] }
 0x128   : > { %v2072_v41 = vpack.c.bf16 %v691_v35, %v689_v34  ;;  %v704_v34 = vld [vmem:[%s2579_s4 + $0x7c0] sm:$0xff]  ;;  %v706_v35 = vld [vmem:[%s2579_s4 + $0x7d0] sm:$0xff] }
 0x12d   : > { %1991 = vmatpush1.bf16.xpose.msra.mxu0 %v1990_v44  ;;  %v431_v44 = vld [vmem:[%s2571_s27 + $0x138] sm:$0xff] }
 0x12e   : > { %2023 = vmatpush1.bf16.xpose.msra.mxu1 %v2022_v45  ;;  %1993 = vmatprep.subr.bf16.mxu0 %v1992_v46  ;;  %v688_v45 = vld [vmem:[%s2579_s4 + $0x740] sm:$0xff]  ;;  %v439_v46 = vld [vmem:[%s2571_s27 + $0x178] sm:$0xff] }
 0x12f   : > { %2025 = vmatprep.subr.bf16.mxu1 %v2024_v47  ;;  %v430_v47 = vld [vmem:[%s2571_s27 + $0x130] sm:$0xff] }
 0x135   : > { %1995 = vmatpush1.bf16.xpose.msra.mxu0 %v1994_v56  ;;  %v2042_v56 = vpack.c.bf16 %v658_v43, %v656_v42 }
 0x136   : > { %2027 = vmatpush1.bf16.xpose.msra.mxu1 %v2026_v57  ;;  %1997 = vmatprep.subr.bf16.mxu0 %v1996_v58  ;;  %v2074_v57 = vpack.c.bf16 %v690_v48, %v688_v45  ;;  %v2044_v58 = vpack.c.bf16 %v663_v52, %v661_v51  ;;  %v678_v45 = vld [vmem:[%s2579_s4 + $0x6f0] sm:$0xff]  ;;  %v1497_v52 = vlaneseq }
 0x137   : > { %2029 = vmatprep.subr.bf16.mxu1 %v2028_v59  ;;  %v2076_v59 = vpack.c.bf16 %v695_v55, %v693_v54  ;;  %v448_v54 = vld [vmem:[%s2571_s27 + $0x1c0] sm:$0xff]  ;;  %v443_v55 = vld [vmem:[%s2571_s27 + $0x198] sm:$0xff] }
 0x13d   : > { %1999 = vmatpush1.bf16.xpose.msra.mxu0 %v1998_v4  ;;  %v2046_v4 = vpack.c.bf16 %v662_v61, %v660_v60  ;;  %v450_v60 = vld [vmem:[%s2571_s27 + $0x1d0] sm:$0xff]  ;;  %v445_v61 = vld [vmem:[%s2571_s27 + $0x1a8] sm:$0xff] }
 0x13e   : > { %2031 = vmatpush1.bf16.xpose.msra.mxu1 %v2030_v5  ;;  %2033 = vmatprep.subr.bf16.mxu0 %v2032_v6  ;;  %v2078_v5 = vpack.c.bf16 %v694_v63, %v692_v62  ;;  %v2048_v6 = vpack.c.bf16 %v667_v1, %v665_v0  ;;  %v453_v62 = vld [vmem:[%s2571_s27 + $0x1e8] sm:$0xff]  ;;  %v444_v1 = vld [vmem:[%s2571_s27 + $0x1a0] sm:$0xff] }
 0x13f   : > { %2065 = vmatprep.subr.bf16.mxu1 %v2064_v7  ;;  %v2080_v7 = vpack.c.bf16 %v699_v3, %v697_v2  ;;  %v2902_v0 = vld [vmem:[%s283_s24] sm:$0xff]  ;;  %v447_v3 = vld [vmem:[%s2571_s27 + $0x1b8] sm:$0xff] }
 0x140   : > { %v452_v2 = vld [vmem:[%s2571_s27 + $0x1e0] sm:$0xff] }
 0x144   : > { %1117 = vmatmul.mubr.f32.vlgmr.msra.gmra.mrb[16].mxu0 %v424_v16  ;;  %v2050_v16 = vpack.c.bf16 %v666_v9, %v664_v8 }
 0x145   : > { %1202 = vmatmul.mubr.f32.vlgmr.msra.gmra.mrb[16].mxu1 %v432_v18  ;;  %2035 = vmatpush1.bf16.xpose.msra.mxu0 %v2034_v17  ;;  %v2082_v17 = vpack.c.bf16 %v698_v11, %v696_v10  ;;  %v2052_v18 = vpack.c.bf16 %v671_v13, %v669_v12 }
 0x146   : > { %2067 = vmatpush1.bf16.xpose.msra.mxu1 %v2066_v19  ;;  %2037 = vmatprep.subr.bf16.mxu0 %v2036_v20  ;;  %v2084_v19 = vpack.c.bf16 %v703_v15, %v701_v14  ;;  %v668_v20 = vld [vmem:[%s2579_s4 + $0x6a0] sm:$0xff] }
 0x147   : > { %2069 = vmatprep.subr.bf16.mxu1 %v2068_v21  ;;  %1121 = vmatprep.mubr.f32.mxu0 %v427_v24  ;;  %v670_v21 = vld [vmem:[%s2579_s4 + $0x6b0] sm:$0xff]  ;;  %v673_v24 = vld [vmem:[%s2579_s4 + $0x6c8] sm:$0xff] }
 0x148   : > { %1206 = vmatprep.mubr.f32.mxu1 %v435_v26  ;;  %1122 = vmatmul.mubr.f32.gmra.mrb[18].mxu0 %v426_v27  ;;  %v705_v26 = vld [vmem:[%s2579_s4 + $0x7c8] sm:$0xff]  ;;  %v707_v27 = vld [vmem:[%s2579_s4 + $0x7d8] sm:$0xff]  ;;  %v2054_v28 = vpack.c.bf16 %v670_v21, %v668_v20 }
 0x149   : > { %1207 = vmatmul.mubr.f32.gmra.mrb[18].mxu1 %v434_v29  ;;  %1126 = vmatprep.mubr.f32.mxu0 %v429_v30  ;;  %v2086_v29 = vpack.c.bf16 %v702_v23, %v700_v22  ;;  %v2056_v30 = vpack.c.bf16 %v675_v25, %v673_v24  ;;  %v2088_v31 = vpack.c.bf16 %v707_v27, %v705_v26 }
 0x14a   : > { %1211 = vmatprep.mubr.f32.mxu1 %v437_v33  ;;  %v674_v33 = vld [vmem:[%s2579_s4 + $0x6d0] sm:$0xff] }
 0x14c   : > { %1127 = vmatmul.mubr.f32.gmra.mrb[20].mxu0 %v428_v37  ;;  %v679_v37 = vld [vmem:[%s2579_s4 + $0x6f8] sm:$0xff] }
 0x14d   : > { %2039 = vmatpush1.bf16.xpose.msra.mxu0 %v2038_v36  ;;  %1212 = vmatmul.mubr.f32.gmra.mrb[20].mxu1 %v436_v40  ;;  %v677_v36 = vld [vmem:[%s2579_s4 + $0x6e8] sm:$0xff]  ;;  %v2058_v40 = vpack.c.bf16 %v674_v33, %v672_v32 }
 0x14e   : > { %2071 = vmatpush1.bf16.xpose.msra.mxu1 %v2070_v38  ;;  %2041 = vmatprep.subr.bf16.mxu0 %v2040_v39  ;;  %v709_v38 = vld [vmem:[%s2579_s4 + $0x7e8] sm:$0xff]  ;;  %v711_v39 = vld [vmem:[%s2579_s4 + $0x7f8] sm:$0xff]  ;;  %v2060_v42 = vpack.c.bf16 %v679_v37, %v677_v36 }
 0x14f   : > { %2073 = vmatprep.subr.bf16.mxu1 %v2072_v41  ;;  %1131 = vmatprep.mubr.f32.mxu0 %v431_v44  ;;  %v2090_v41 = vpack.c.bf16 %v706_v35, %v704_v34  ;;  %v2092_v43 = vpack.c.bf16 %v711_v39, %v709_v38  ;;  %v676_v44 = vld [vmem:[%s2579_s4 + $0x6e0] sm:$0xff] }
 0x150   : > { %1216 = vmatprep.mubr.f32.mxu1 %v439_v46  ;;  %1132 = vmatmul.mubr.f32.gmra.mrb[22].mxu0 %v430_v47  ;;  %v708_v46 = vld [vmem:[%s2579_s4 + $0x7e0] sm:$0xff]  ;;  %v710_v47 = vld [vmem:[%s2579_s4 + $0x7f0] sm:$0xff]  ;;  %v2062_v48 = vpack.c.bf16 %v678_v45, %v676_v44 }
 0x151   : > { %1217 = vmatmul.mubr.f32.gmra.mrb[22].mxu1 %v438_v49  ;;  %1286 = vmatprep.mubr.f32.mxu0 %v441_v50  ;;  %v2094_v49 = vpack.c.bf16 %v710_v47, %v708_v46  ;;  %v2358_v50 = vmov 1966171168  }
 0x152   : > { %1371 = vmatprep.mubr.f32.mxu1 %v449_v53  ;;  %v1495_v51 = vunpack.c.l.s4 %v2358_v50  ;;  %v440_v53 = vld [vmem:[%s2571_s27 + $0x180] sm:$0xff] }
 0x155   : > { %2043 = vmatpush1.bf16.xpose.msra.mxu0 %v2042_v56  ;;  %v451_v56 = vld [vmem:[%s2571_s27 + $0x1d8] sm:$0xff] }
 0x156   : > { %2075 = vmatpush1.bf16.xpose.msra.mxu1 %v2074_v57  ;;  %2045 = vmatprep.subr.bf16.mxu0 %v2044_v58  ;;  %v1496_v57 = vunpack.c.0.s8 %v1495_v51  ;;  %v1498_v58 = vshrl.u32 %v1497_v52, 7 }
 0x157   : > { %2077 = vmatprep.subr.bf16.mxu1 %v2076_v59  ;;  %v442_v59 = vld [vmem:[%s2571_s27 + $0x190] sm:$0xff] }
 0x158   : > { %v2900_v63 = vsub.s32 %v1496_v57, %v1498_v58  ;;  %v2913_v10 = vsub.s32 0, %v1498_v58 }
 0x15d   : > { %2047 = vmatpush1.bf16.xpose.msra.mxu0 %v2046_v4  ;;  %v455_v4 = vld [vmem:[%s2571_s27 + $0x1f8] sm:$0xff] }
 0x15e   : > { %2079 = vmatpush1.bf16.xpose.msra.mxu1 %v2078_v5  ;;  %2049 = vmatprep.subr.bf16.mxu0 %v2048_v6  ;;  %v1500_v5 = vrot.slane %v2902_v0, %v2900_v63  ;;  %v446_v6 = vld [vmem:[%s2571_s27 + $0x1b0] sm:$0xff] }
 0x15f   : > { %2081 = vmatprep.subr.bf16.mxu1 %v2080_v7  ;;  %v454_v7 = vld [vmem:[%s2571_s27 + $0x1f0] sm:$0xff] }
 0x160   : > { %v1508_v8 = vcombine.high %v1500_v5, %v1500_v5  ;;  %v1516_v9 = vrot.slane %v1500_v5, %v2900_v63 }
 0x162   : > { %v1530_v11 = vrot.slane %v1508_v8, %v2900_v63  ;;  %v1545_v12 = vrot.slane %v1516_v9, %v2913_v10  ;;  %v1538_v38 = vcombine.high %v1516_v9, %v1516_v9 }
 0x164   : > { %v1549_v14 = vrot.slane %v1530_v11, %v2913_v10  ;;  %v1540_v39 = vcombine.high %v1530_v11, %v1530_v11 }
 0x165   : > { %2051 = vmatpush1.bf16.xpose.msra.mxu0 %v2050_v16 }
 0x166   : > { %2083 = vmatpush1.bf16.xpose.msra.mxu1 %v2082_v17  ;;  %2053 = vmatprep.subr.bf16.mxu0 %v2052_v18 }
 0x167   : > { %2085 = vmatprep.subr.bf16.mxu1 %v2084_v19 }
 0x16d   : > { %2055 = vmatpush1.bf16.xpose.msra.mxu0 %v2054_v28 }
 0x16e   : > { %2087 = vmatpush1.bf16.xpose.msra.mxu1 %v2086_v29  ;;  %2057 = vmatprep.subr.bf16.mxu0 %v2056_v30 }
 0x16f   : > { %2089 = vmatprep.subr.bf16.mxu1 %v2088_v31 }
 0x175   : > { %2059 = vmatpush1.bf16.xpose.msra.mxu0 %v2058_v40  ;;  %v1553_v40 = vrot.slane %v1538_v38, %v2913_v10 }
 0x176   : > { %2091 = vmatpush1.bf16.xpose.msra.mxu1 %v2090_v41  ;;  %2061 = vmatprep.subr.bf16.mxu0 %v2060_v42  ;;  %v1557_v42 = vrot.slane %v1540_v39, %v2913_v10 }
 0x177   : > { %2093 = vmatprep.subr.bf16.mxu1 %v2092_v43 }
 0x17d   : > { %2063 = vmatpush1.bf16.xpose.msra.mxu0 %v2062_v48 }
 0x17e   : > { %2095 = vmatpush1.bf16.xpose.msra.mxu1 %v2094_v49 }
 0x184   : > { %1287 = vmatmul.mubr.f32.vlgmr.msra.gmra.mrb[24].mxu0 %v440_v53 }
 0x185   : > { %1372 = vmatmul.mubr.f32.vlgmr.msra.gmra.mrb[24].mxu1 %v448_v54  ;;  %1291 = vmatprep.mubr.f32.mxu0 %v443_v55 }
 0x186   : > { %1376 = vmatprep.mubr.f32.mxu1 %v451_v56 }
 0x188   : > { %1292 = vmatmul.mubr.f32.gmra.mrb[26].mxu0 %v442_v59 }
 0x189   : > { %1377 = vmatmul.mubr.f32.gmra.mrb[26].mxu1 %v450_v60  ;;  %1296 = vmatprep.mubr.f32.mxu0 %v445_v61 }
 0x18a   : > { %1381 = vmatprep.mubr.f32.mxu1 %v453_v62 }
 0x18c   : > { %1297 = vmatmul.mubr.f32.gmra.mrb[28].mxu0 %v444_v1 }
 0x18d   : > { %1382 = vmatmul.mubr.f32.gmra.mrb[28].mxu1 %v452_v2  ;;  %1301 = vmatprep.mubr.f32.mxu0 %v447_v3 }
 0x18e   : > { %1386 = vmatprep.mubr.f32.mxu1 %v455_v4  ;;  %v1493_v4 = vcombine.high %v2902_v0, %v2902_v0 }
 0x190   : > { %1302 = vmatmul.mubr.f32.gmra.mrb[30].mxu0 %v446_v6  ;;  %v1507_v5 = vrot.slane %v1493_v4, %v2900_v63 }
 0x191   : > { %1387 = vmatmul.mubr.f32.gmra.mrb[30].mxu1 %v454_v7 }
 0x192   : > { %v1509_v6 = vcombine.high %v1507_v5, %v1507_v5  ;;  %v1523_v7 = vrot.slane %v1507_v5, %v2900_v63 }
 0x194   : > { %v1537_v8 = vrot.slane %v1509_v6, %v2900_v63  ;;  %v1561_v9 = vrot.slane %v1523_v7, %v2913_v10 }
 0x197   : > { %v778_v13 = vpop.f32.mrb[0].mxu0 }
 0x198   : > { %v863_v15 = vpop.f32.mrb[0].mxu1  ;;  %v780_v16 = vpop.f32.mrb[1].mxu0  ;;  %v1582_v18 = vadd.f32 %v1545_v12, %v778_v13 }
 0x199   : > { %v865_v17 = vpop.f32.mrb[1].mxu1  ;;  %v1586_v19 = vadd.f32 %v1549_v14, %v863_v15 }
 0x19a   : > { %1614 = vst [vmem:[%s2919_s19] sm:$0xff] %v1582_v18 }
 0x19b   : > { %v783_v20 = vpop.f32.mrb[2].mxu0  ;;  %1618 = vst [vmem:[%s2919_s19 + $0x20] sm:$0xff] %v1586_v19 }
 0x19c   : > { %v868_v21 = vpop.f32.mrb[2].mxu1  ;;  %v785_v22 = vpop.f32.mrb[3].mxu0  ;;  %v1583_v24 = vadd.f32 %v1545_v12, %v783_v20 }
 0x19d   : > { %v870_v23 = vpop.f32.mrb[3].mxu1  ;;  %v1587_v25 = vadd.f32 %v1549_v14, %v868_v21 }
 0x19e   : > { %1615 = vst [vmem:[%s2919_s19 + $0x8] sm:$0xff] %v1583_v24 }
 0x19f   : > { %v788_v26 = vpop.f32.mrb[4].mxu0  ;;  %1619 = vst [vmem:[%s2919_s19 + $0x28] sm:$0xff] %v1587_v25 }
 0x1a0   : > { %v873_v27 = vpop.f32.mrb[4].mxu1  ;;  %v790_v28 = vpop.f32.mrb[5].mxu0  ;;  %v1584_v30 = vadd.f32 %v1545_v12, %v788_v26 }
 0x1a1   : > { %v875_v29 = vpop.f32.mrb[5].mxu1  ;;  %v1588_v31 = vadd.f32 %v1549_v14, %v873_v27 }
 0x1a2   : > { %1616 = vst [vmem:[%s2919_s19 + $0x10] sm:$0xff] %v1584_v30 }
 0x1a3   : > { %v793_v32 = vpop.f32.mrb[6].mxu0  ;;  %1620 = vst [vmem:[%s2919_s19 + $0x30] sm:$0xff] %v1588_v31 }
 0x1a4   : > { %v878_v33 = vpop.f32.mrb[6].mxu1  ;;  %v795_v34 = vpop.f32.mrb[7].mxu0  ;;  %v1585_v36 = vadd.f32 %v1545_v12, %v793_v32  ;;  %v1565_v12 = vrot.slane %v1537_v8, %v2913_v10 }
 0x1a5   : > { %v880_v35 = vpop.f32.mrb[7].mxu1  ;;  %v1589_v37 = vadd.f32 %v1549_v14, %v878_v33  ;;  %v1539_v34 = vcombine.high %v1523_v7, %v1523_v7 }
 0x1a6   : > { %1617 = vst [vmem:[%s2919_s19 + $0x18] sm:$0xff] %v1585_v36  ;;  %v1541_v35 = vcombine.high %v1537_v8, %v1537_v8 }
 0x1a7   : > { %1621 = vst [vmem:[%s2919_s19 + $0x38] sm:$0xff] %v1589_v37  ;;  %v1569_v36 = vrot.slane %v1539_v34, %v2913_v10 }
 0x1a8   : > { %v1573_v38 = vrot.slane %v1541_v35, %v2913_v10 }
 0x1d7   : > { %v948_v41 = vpop.f32.mrb[8].mxu0 }
 0x1d8   : > { %v1033_v43 = vpop.f32.mrb[8].mxu1  ;;  %v950_v44 = vpop.f32.mrb[9].mxu0  ;;  %v1590_v46 = vadd.f32 %v1553_v40, %v948_v41 }
 0x1d9   : > { %v1035_v45 = vpop.f32.mrb[9].mxu1  ;;  %v1594_v47 = vadd.f32 %v1557_v42, %v1033_v43 }
 0x1da   : > { %1622 = vst [vmem:[%s2919_s19 + $0x40] sm:$0xff] %v1590_v46 }
 0x1db   : > { %v953_v48 = vpop.f32.mrb[10].mxu0  ;;  %1626 = vst [vmem:[%s2919_s19 + $0x60] sm:$0xff] %v1594_v47 }
 0x1dc   : > { %v1038_v49 = vpop.f32.mrb[10].mxu1  ;;  %v955_v50 = vpop.f32.mrb[11].mxu0  ;;  %v1591_v52 = vadd.f32 %v1553_v40, %v953_v48 }
 0x1dd   : > { %v1040_v51 = vpop.f32.mrb[11].mxu1  ;;  %v1595_v53 = vadd.f32 %v1557_v42, %v1038_v49 }
 0x1de   : > { %1623 = vst [vmem:[%s2919_s19 + $0x48] sm:$0xff] %v1591_v52 }
 0x1df   : > { %v958_v54 = vpop.f32.mrb[12].mxu0  ;;  %1627 = vst [vmem:[%s2919_s19 + $0x68] sm:$0xff] %v1595_v53 }
 0x1e0   : > { %v1043_v55 = vpop.f32.mrb[12].mxu1  ;;  %v960_v56 = vpop.f32.mrb[13].mxu0  ;;  %v1592_v58 = vadd.f32 %v1553_v40, %v958_v54 }
 0x1e1   : > { %v1045_v57 = vpop.f32.mrb[13].mxu1  ;;  %v1596_v59 = vadd.f32 %v1557_v42, %v1043_v55 }
 0x1e2   : > { %1624 = vst [vmem:[%s2919_s19 + $0x50] sm:$0xff] %v1592_v58 }
 0x1e3   : > { %v963_v60 = vpop.f32.mrb[14].mxu0  ;;  %1628 = vst [vmem:[%s2919_s19 + $0x70] sm:$0xff] %v1596_v59 }
 0x1e4   : > { %v1048_v61 = vpop.f32.mrb[14].mxu1  ;;  %v965_v62 = vpop.f32.mrb[15].mxu0  ;;  %v1593_v2 = vadd.f32 %v1553_v40, %v963_v60 }
 0x1e5   : > { %v1050_v1 = vpop.f32.mrb[15].mxu1  ;;  %v1597_v3 = vadd.f32 %v1557_v42, %v1048_v61 }
 0x1e6   : > { %1625 = vst [vmem:[%s2919_s19 + $0x58] sm:$0xff] %v1593_v2 }
 0x1e7   : > { %1629 = vst [vmem:[%s2919_s19 + $0x78] sm:$0xff] %v1597_v3 }
 0x217   : > { %v1118_v11 = vpop.f32.mrb[16].mxu0 }
 0x218   : > { %v1203_v13 = vpop.f32.mrb[16].mxu1  ;;  %v1120_v14 = vpop.f32.mrb[17].mxu0  ;;  %v1598_v16 = vadd.f32 %v1561_v9, %v1118_v11 }
 0x219   : > { %v1205_v15 = vpop.f32.mrb[17].mxu1  ;;  %v1602_v0 = vadd.f32 %v1565_v12, %v1203_v13 }
 0x21a   : > { %1630 = vst [vmem:[%s2919_s19 + $0x80] sm:$0xff] %v1598_v16 }
 0x21b   : > { %v1123_v17 = vpop.f32.mrb[18].mxu0  ;;  %1634 = vst [vmem:[%s2919_s19 + $0xa0] sm:$0xff] %v1602_v0 }
 0x21c   : > { %v1208_v18 = vpop.f32.mrb[18].mxu1  ;;  %v1125_v19 = vpop.f32.mrb[19].mxu0  ;;  %v1599_v20 = vadd.f32 %v1561_v9, %v1123_v17 }
 0x21d   : > { %v1210_v63 = vpop.f32.mrb[19].mxu1  ;;  %v1603_v21 = vadd.f32 %v1565_v12, %v1208_v18 }
 0x21e   : > { %1631 = vst [vmem:[%s2919_s19 + $0x88] sm:$0xff] %v1599_v20 }
 0x21f   : > { %v1128_v22 = vpop.f32.mrb[20].mxu0  ;;  %1635 = vst [vmem:[%s2919_s19 + $0xa8] sm:$0xff] %v1603_v21 }
 0x220   : > { %v1213_v23 = vpop.f32.mrb[20].mxu1  ;;  %v1130_v24 = vpop.f32.mrb[21].mxu0  ;;  %v1600_v26 = vadd.f32 %v1561_v9, %v1128_v22 }
 0x221   : > { %v1215_v25 = vpop.f32.mrb[21].mxu1  ;;  %v1604_v27 = vadd.f32 %v1565_v12, %v1213_v23 }
 0x222   : > { %1632 = vst [vmem:[%s2919_s19 + $0x90] sm:$0xff] %v1600_v26 }
 0x223   : > { %v1133_v28 = vpop.f32.mrb[22].mxu0  ;;  %1636 = vst [vmem:[%s2919_s19 + $0xb0] sm:$0xff] %v1604_v27 }
 0x224   : > { %v1218_v29 = vpop.f32.mrb[22].mxu1  ;;  %v1135_v30 = vpop.f32.mrb[23].mxu0  ;;  %v1601_v32 = vadd.f32 %v1561_v9, %v1133_v28 }
 0x225   : > { %v1220_v31 = vpop.f32.mrb[23].mxu1  ;;  %v1605_v33 = vadd.f32 %v1565_v12, %v1218_v29 }
 0x226   : > { %1633 = vst [vmem:[%s2919_s19 + $0x98] sm:$0xff] %v1601_v32 }
 0x227   : > { %1637 = vst [vmem:[%s2919_s19 + $0xb8] sm:$0xff] %v1605_v33 }
 0x257   : > { %v1288_v37 = vpop.f32.mrb[24].mxu0 }
 0x258   : > { %v1373_v39 = vpop.f32.mrb[24].mxu1  ;;  %v1290_v40 = vpop.f32.mrb[25].mxu0  ;;  %v1606_v42 = vadd.f32 %v1569_v36, %v1288_v37 }
 0x259   : > { %v1375_v41 = vpop.f32.mrb[25].mxu1  ;;  %v1610_v43 = vadd.f32 %v1573_v38, %v1373_v39 }
 0x25a   : > { %1638 = vst [vmem:[%s2919_s19 + $0xc0] sm:$0xff] %v1606_v42 }
 0x25b   : > { %v1293_v44 = vpop.f32.mrb[26].mxu0  ;;  %1642 = vst [vmem:[%s2919_s19 + $0xe0] sm:$0xff] %v1610_v43 }
 0x25c   : > { %v1378_v45 = vpop.f32.mrb[26].mxu1  ;;  %v1295_v46 = vpop.f32.mrb[27].mxu0  ;;  %v1607_v48 = vadd.f32 %v1569_v36, %v1293_v44 }
 0x25d   : > { %v1380_v47 = vpop.f32.mrb[27].mxu1  ;;  %v1611_v49 = vadd.f32 %v1573_v38, %v1378_v45 }
 0x25e   : > { %1639 = vst [vmem:[%s2919_s19 + $0xc8] sm:$0xff] %v1607_v48 }
 0x25f   : > { %v1298_v50 = vpop.f32.mrb[28].mxu0  ;;  %1643 = vst [vmem:[%s2919_s19 + $0xe8] sm:$0xff] %v1611_v49 }
 0x260   : > { %v1383_v10 = vpop.f32.mrb[28].mxu1  ;;  %v1300_v51 = vpop.f32.mrb[29].mxu0  ;;  %v1608_v53 = vadd.f32 %v1569_v36, %v1298_v50 }
 0x261   : > { %v1385_v52 = vpop.f32.mrb[29].mxu1  ;;  %v1612_v54 = vadd.f32 %v1573_v38, %v1383_v10 }
 0x262   : > { %1640 = vst [vmem:[%s2919_s19 + $0xd0] sm:$0xff] %v1608_v53 }
 0x263   : > { %v1303_v55 = vpop.f32.mrb[30].mxu0  ;;  %1644 = vst [vmem:[%s2919_s19 + $0xf0] sm:$0xff] %v1612_v54 }
 0x264   : > { %v1388_v56 = vpop.f32.mrb[30].mxu1  ;;  %v1305_v57 = vpop.f32.mrb[31].mxu0  ;;  %v1609_v59 = vadd.f32 %v1569_v36, %v1303_v55 }
 0x265   : > { %v1390_v58 = vpop.f32.mrb[31].mxu1  ;;  %v1613_v60 = vadd.f32 %v1573_v38, %v1388_v56 }
 0x266   : > { %1641 = vst [vmem:[%s2919_s19 + $0xd8] sm:$0xff] %v1609_v59 }
 0x267   : > { %1645 = vst [vmem:[%s2919_s19 + $0xf8] sm:$0xff] %v1613_v60 }
 0x268   : > { %2278 = shalt.err (!%p2275_p13)
}
 0x269   : > { %s2279_s9 = scalar_lea.hbm %s2967_s20, 4096  ;;  %s2283_s17 = scalar_lea.hbm %s3023_s3, 8192 }
 0x26a   : > { %p2280_p11 = scmp.ne.s32.totalorder %s2967_s20, %s2279_s9  ;;  %p2284_p5 = scmp.lt.u32.totalorder %s2967_s20, %s3023_s3 }
 0x26b   : > { %p2285_p1 = scmp.lt.u32.totalorder %s2283_s17, %s2279_s9  ;;  %p2287_p0 = scmp.lt.u32.totalorder %s2279_s9, %s2967_s20 }
 0x26c   : > { %p2281_p7 = pnand %p2280_p11, %p3055_p6 }
 0x26d   : > { %p2286_p2 = por %p2285_p1, %p2284_p5 }
 0x26e   : > { %p2282_p3 = pneg %p2281_p7 }
 0x26f   : > { %p2288_p8 = por %p2287_p0, %p2286_p2 }
 0x271   : > { %p2289_p9 = pnand %p2288_p8, %p2282_p3 }
 0x273   : > { %2292 = shalt.err (!%p2289_p9)
}
 0x274   : > { %s2360_s29 = smov 128   ;;  %s2361_s11 = smov 8  }
 0x275   : > { %2102 = dma.vmem_to_hbm [thread:$0]  (%p3055_p6), %s2969_s30, 4096, %s2967_s20, %s1647_s15, %s2360_s29, %s2360_s29, %s2361_s11  }
 0x276 PF: > { %s3056_s21 = sld [smem:[#allocation16_spill]]  ;;  %s3057_s4 = sld [smem:[#allocation13_spill]] }
 0x277   : > { %s1679_s18 = sand.u32 1, %s2331_s12  }
 0x278   : > { %s1680_s24 = scalar_lea.sflag [#allocation4], %s1679_s18 }
 0x27c   : > { %p3058_p12 = scmp.ne.s32.totalorder %s3056_s21, 0  ;;  %p3059_p4 = scmp.ge.s32.totalorder %s3057_s4, 2 }
 0x27e   : > { %p2115_p10 = pnand %p3059_p4, %p3058_p12 }
 0x280   : > { %2326 = dma.done.wait (!%p2115_p10), %s1680_s24, 4096  }
 0x281   : > { %2328 = vsyncadd (!%p2115_p10), %s1680_s24, 4294963200  ;;  %s22_s17 = sadd.s32 1, %s3057_s4   ;;  %s3060_s10 = sld [smem:[#allocation12_spill]] }
 0x282   : > { %p19_p13 = scmp.ge.s32.totalorder %s22_s17, 4   ;;  %s3061_s14 = sld [smem:[#allocation15_spill]] }
 0x283   : > { %s3062_s25 = sld [smem:[#allocation14_spill]]  ;;  %s3063_s12 = smov %s2335_s13 }
 0x284   : > { %s3065_s15 = smov %s2347_s16  ;;  %21 = sbr.rel (!%p19_p13) target bundleno = 11 (0xb), region = 109 }
 0x287   : > { %s3064_s13 = smov %s3060_s10 }
 0x289   : > { %s3066_s16 = smov %s3062_s25 }
 0x28b   :  { %1685 = vsyncpa [#allocation3], 1 }
 0x28c   :  { %1687 = vsyncpa [#allocation3 + $0x1], 1 }
 0x28d   :  { %1688 = vsyncpa [#allocation6], 1 }
 0x28e   :  { %1690 = vsyncpa [#allocation6 + $0x1], 1 }
 0x28f   :  { %1691 = vsyncpa [#allocation4], 1 }
 0x290   :  { %1693 = vsyncpa [#allocation4 + $0x1], 1 }

</bundles_post_ra>
